<compile_context>
chip_gen: v7x
topology: tpu7x:2x2x1
jax: 0.10.0
libtpu: 0.0.40
codegen_flags: <defaults>
</compile_context>

<pallas_src>
from functools import partial

import jax
import jax.numpy as jnp
from jax.experimental import pallas as pl
from jax.experimental.pallas import tpu as pltpu

BN_EPS = 1e-5
LEAKY_SLOPE = 0.2
_LANES = 128
# Dtype fed to the MXU. float32 keeps the kernel numerically tight against the
# reference at these tiny sizes; flip to jnp.bfloat16 for large-batch
# throughput (halves patch HBM/VMEM traffic, ~2x MXU rate on v6e/v7x).
# Accumulation stays f32 via preferred_element_type; BN / activations stay f32.
MATMUL_DTYPE = jnp.float32


def _leaky(x):
    return jnp.where(x >= 0.0, x, LEAKY_SLOPE * x)


# ----------------------------------------------------------------------------
# The single fused Pallas kernel (grid = layer-2 output positions)
# ----------------------------------------------------------------------------
def _disc_fused_kernel(p1_ref, w1_ref, b1_ref, w2_ref, bn2_ref,
                       w3_ref, bn3_ref, w4_ref, b4_ref, o_ref,
                       acc2_ref, s2_ref, q2_ref, *, oh2, batch, batch_pad):
    """One grid step = one layer-2 output position (i, j) over the padded batch.

    p1_ref : (16*4*4*C, BP)  input patches for this position (rows: tap,r,s,c)
    w1_ref : (128, 16*4*4*C) block-diagonal layer-1 weight (16 copies of (8,48))
    b1_ref : (128, 1)        layer-1 bias tiled per tap
    w2_ref : (16, 128)       layer-2 weight, contraction = (tap, ci)
    bn2_ref: (16, 3)         [conv bias | gamma | beta]
    w3_ref : (32, 256)       layer-3 weight, contraction = (tap, ci)
    bn3_ref: (32, 3)
    w4_ref : (32, 1), b4_ref: (1, 1)
    o_ref  : (1, BP)         sigmoid scores (padded lanes sliced off outside)
    acc2_ref: (16, oh2*oh2*BP) VMEM scratch, resident pre-BN layer-2 output
    s2_ref / q2_ref: (16, 1)   BN2 sum / sum-of-squares accumulators
    """
    f32 = jnp.float32
    pos = pl.program_id(0)
    n_pos = pl.num_programs(0)

    @pl.when(pos == 0)
    def _init():
        s2_ref[...] = jnp.zeros_like(s2_ref)
        q2_ref[...] = jnp.zeros_like(q2_ref)

    # 1.0 for real batch lanes, 0.0 for zero-padded ones (masks BN statistics).
    lane = jax.lax.broadcasted_iota(jnp.int32, (1, batch_pad), 1)
    fmask = (lane < batch).astype(f32)

    # ---- layers 1+2: two dense MXU dots (no per-tap loop).
    p1 = p1_ref[...].astype(MATMUL_DTYPE)                        # (K1, BP)
    h1 = jnp.dot(w1_ref[...].astype(MATMUL_DTYPE), p1,
                 preferred_element_type=f32) + b1_ref[...]
    h1 = _leaky(h1)                                              # (128, BP)
    y2 = jnp.dot(w2_ref[...].astype(MATMUL_DTYPE),
                 h1.astype(MATMUL_DTYPE),
                 preferred_element_type=f32) + bn2_ref[:, 0:1]   # (16, BP)

    # Keep the pre-BN layer-2 map resident in VMEM (lane-aligned store).
    col0 = pl.multiple_of(pos * batch_pad, batch_pad)
    acc2_ref[:, pl.ds(col0, batch_pad)] = y2

    # Single-pass BN statistics (var = E[x^2] - E[x]^2), padded lanes masked.
    y2m = y2 * fmask
    s2_ref[...] += jnp.sum(y2m, axis=1, keepdims=True)
    q2_ref[...] += jnp.sum(y2m * y2, axis=1, keepdims=True)

    # ---- finalize: BN2 + LeakyReLU, layer 3 (one K=256 dot) + BN3, layer 4.
    @pl.when(pos == n_pos - 1)
    def _fin():
        inv_n2 = 1.0 / float(batch * oh2 * oh2)
        mu2 = s2_ref[...] * inv_n2                               # (16, 1)
        var2 = q2_ref[...] * inv_n2 - mu2 * mu2
        scale2 = jax.lax.rsqrt(var2 + BN_EPS) * bn2_ref[:, 1:2]
        shift2 = bn2_ref[:, 2:3] - mu2 * scale2
        a2 = _leaky(acc2_ref[...] * scale2 + shift2)             # (16, oh2*oh2*BP)

        # Layer 3 collapses the 5x5 map to 1x1: gather its 16 lane-aligned
        # blocks onto the contraction axis and do ONE (32,256)x(256,BP) dot.
        blocks = []
        for kh in range(4):
            for kw in range(4):
                c0 = (kh * oh2 + kw) * batch_pad
                blocks.append(a2[:, c0:c0 + batch_pad])
        a3_in = jnp.concatenate(blocks, axis=0)                  # (256, BP)
        y3 = jnp.dot(w3_ref[...].astype(MATMUL_DTYPE),
                     a3_in.astype(MATMUL_DTYPE),
                     preferred_element_type=f32) + bn3_ref[:, 0:1]   # (32, BP)

        y3m = y3 * fmask
        inv_b = 1.0 / float(batch)
        mu3 = jnp.sum(y3m, axis=1, keepdims=True) * inv_b
        var3 = jnp.sum(y3m * y3, axis=1, keepdims=True) * inv_b - mu3 * mu3
        scale3 = jax.lax.rsqrt(var3 + BN_EPS) * bn3_ref[:, 1:2]
        shift3 = bn3_ref[:, 2:3] - mu3 * scale3
        a3 = _leaky(y3 * scale3 + shift3)                        # (32, BP)

        # Layer 4 (1x1 conv) folded in: 32-wide reduction + stable sigmoid.
        logit = jnp.sum(a3 * w4_ref[...], axis=0, keepdims=True) + b4_ref[...]
        e = jnp.exp(-jnp.abs(logit))
        inv = 1.0 / (1.0 + e)
        o_ref[...] = jnp.where(logit >= 0.0, inv, e * inv)


# ----------------------------------------------------------------------------
# Host-side glue: per-(layer-2 position) input patch matrix from x only.
# Row order of K1 is (layer-2 tap (kh,kw), layer-1 tap (r,s), channel c).
# Column order of M is (layer-2 output position (i,j), padded batch b).
# ----------------------------------------------------------------------------
def _build_patches(x, batch_pad):
    """x: (B, H, W, C) f32 -> (16*4*4*C, oh2*oh2*batch_pad)."""
    B, H, W, C = x.shape
    oh1 = (H - 4) // 2 + 1
    oh2 = (oh1 - 4) // 2 + 1
    span = 4 * oh2
    if batch_pad > B:
        x = jnp.pad(x, ((0, batch_pad - B), (0, 0), (0, 0), (0, 0)))
    taps = []
    for kh in range(4):
        for kw in range(4):
            # layer-2 output (i,j), tap (kh,kw), layer-1 tap (r,s) reads input
            # pixel (4i + 2kh + r, 4j + 2kw + s)
            xt = x[:, 2 * kh:2 * kh + span, 2 * kw:2 * kw + span, :]
            xt = xt.reshape(batch_pad, oh2, 4, oh2, 4, C)   # (b, i, r, j, s, c)
            xt = xt.transpose(2, 4, 5, 1, 3, 0)             # (r, s, c, i, j, b)
            taps.append(xt.reshape(16 * C, oh2 * oh2 * batch_pad))
    return jnp.concatenate(taps, axis=0), oh2


# ----------------------------------------------------------------------------
# Full Discriminator forward (single pallas_call)
# ----------------------------------------------------------------------------
def discriminator_forward(x_nhwc, P):
    B, H, W, C = x_nhwc.shape
    assert H == W, "square inputs only"
    oh1 = (H - 4) // 2 + 1
    oh2 = (oh1 - 4) // 2 + 1
    oh3 = (oh2 - 4) // 2 + 1
    assert oh3 == 1 and 2 * 3 + 4 * oh2 <= H

    bp = _LANES * pl.cdiv(B, _LANES)        # lane-dense padded batch
    n_pos = oh2 * oh2
    k1 = 16 * 4 * 4 * C

    p1_all, _ = _build_patches(x_nhwc.astype(jnp.float32), bp)
    p1_all = p1_all.astype(MATMUL_DTYPE)

    # --- weight repacking (host side, once) ---
    w1t = P["w1"].reshape(4 * 4 * C, 8).T                                  # (8, 48)
    w1_big = jnp.kron(jnp.eye(16, dtype=jnp.float32), w1t).astype(MATMUL_DTYPE)  # (128, k1)
    b1_big = jnp.tile(P["b1"].reshape(8, 1), (16, 1)).astype(jnp.float32)  # (128, 1)
    w2_flat = P["w2"].transpose(3, 0, 1, 2).reshape(16, 128).astype(MATMUL_DTYPE)
    bn2 = jnp.stack([P["b2"], P["g2"], P["bt2"]], axis=1).astype(jnp.float32)
    w3_flat = P["w3"].transpose(3, 0, 1, 2).reshape(32, 256).astype(MATMUL_DTYPE)
    bn3 = jnp.stack([P["b3"], P["g3"], P["bt3"]], axis=1).astype(jnp.float32)
    w4c = P["w4"].reshape(32, 1).astype(jnp.float32)
    b4c = P["b4"].reshape(1, 1).astype(jnp.float32)

    kernel = partial(_disc_fused_kernel, oh2=oh2, batch=B, batch_pad=bp)
    grid_spec = pltpu.PrefetchScalarGridSpec(
        num_scalar_prefetch=0,
        grid=(n_pos,),
        in_specs=[
            pl.BlockSpec((k1, bp), lambda i: (0, i)),     # patches (pipelined)
            pl.BlockSpec((128, k1), lambda i: (0, 0)),    # w1 (block-diagonal)
            pl.BlockSpec((128, 1), lambda i: (0, 0)),     # b1
            pl.BlockSpec((16, 128), lambda i: (0, 0)),    # w2
            pl.BlockSpec((16, 3), lambda i: (0, 0)),      # bn2
            pl.BlockSpec((32, 256), lambda i: (0, 0)),    # w3
            pl.BlockSpec((32, 3), lambda i: (0, 0)),      # bn3
            pl.BlockSpec((32, 1), lambda i: (0, 0)),      # w4
            pl.BlockSpec((1, 1), lambda i: (0, 0)),       # b4
        ],
        out_specs=pl.BlockSpec((1, bp), lambda i: (0, 0)),
        scratch_shapes=[
            pltpu.VMEM((16, n_pos * bp), jnp.float32),    # resident pre-BN layer-2 map
            pltpu.VMEM((16, 1), jnp.float32),             # BN2 sum
            pltpu.VMEM((16, 1), jnp.float32),             # BN2 sum of squares
        ],
    )
    out = pl.pallas_call(
        kernel,
        out_shape=jax.ShapeDtypeStruct((1, bp), jnp.float32),
        grid_spec=grid_spec,
        compiler_params=pltpu.CompilerParams(
            dimension_semantics=("arbitrary",),
            vmem_limit_bytes=64 * 1024 * 1024,
        ),
    )(p1_all, w1_big, b1_big, w2_flat, bn2, w3_flat, bn3, w4c, b4c)

    # PyTorch: output.squeeze() -> all unit dims removed -> (B,) here.
    return jnp.squeeze(out[:, :B])


# ----------------------------------------------------------------------------
# Pure-JAX reference (for correctness check)
# ----------------------------------------------------------------------------
def reference_forward(x, P):
    dn = ("NHWC", "HWIO", "NHWC")
    prec = jax.lax.Precision.HIGHEST

    def bn(y, g, b):
        m = jnp.mean(y, axis=(0, 1, 2))
        v = jnp.mean(jnp.square(y - m), axis=(0, 1, 2))
        return (y - m) / jnp.sqrt(v + BN_EPS) * g + b

    def leaky(y):
        return jnp.where(y >= 0, y, LEAKY_SLOPE * y)

    y = jax.lax.conv_general_dilated(x, P["w1"], (2, 2), "VALID",
                                     dimension_numbers=dn, precision=prec) + P["b1"]
    y = leaky(y)
    y = jax.lax.conv_general_dilated(y, P["w2"], (2, 2), "VALID",
                                     dimension_numbers=dn, precision=prec) + P["b2"]
    y = leaky(bn(y, P["g2"], P["bt2"]))
    y = jax.lax.conv_general_dilated(y, P["w3"], (2, 2), "VALID",
                                     dimension_numbers=dn, precision=prec) + P["b3"]
    y = leaky(bn(y, P["g3"], P["bt3"]))
    y = jax.lax.conv_general_dilated(y, P["w4"], (1, 1), "VALID",
                                     dimension_numbers=dn, precision=prec) + P["b4"]
    y = jax.nn.sigmoid(y)
    return jnp.squeeze(y)


# ----------------------------------------------------------------------------
# Deterministic parameter construction + run
# ----------------------------------------------------------------------------
def make_params(key, image_nc):
    ks = jax.random.split(key, 14)
    norm = lambda k, s, sc=0.1: (jax.random.normal(k, s) * sc).astype(jnp.float32)
    return {
        # HWIO conv weights
        "w1": norm(ks[0], (4, 4, image_nc, 8)),
        "b1": norm(ks[1], (8,)),
        "w2": norm(ks[2], (4, 4, 8, 16)),
        "b2": norm(ks[3], (16,)),
        "g2": 1.0 + norm(ks[4], (16,)),
        "bt2": norm(ks[5], (16,)),
        "w3": norm(ks[6], (4, 4, 16, 32)),
        "b3": norm(ks[7], (32,)),
        "g3": 1.0 + norm(ks[8], (32,)),
        "bt3": norm(ks[9], (32,)),
        "w4": norm(ks[10], (1, 1, 32, 1)),
        "b4": norm(ks[11], (1,)),
    }


if __name__ == "__main__":
    image_nc = 3
    B, H, W = 2, 28, 28  # 28 -> 13 -> 5 -> 1 spatial pipeline

    key = jax.random.PRNGKey(0)
    k_x, k_p = jax.random.split(key)
    x_nhwc = jax.random.normal(k_x, (B, H, W, image_nc), dtype=jnp.float32)
    params = make_params(k_p, image_nc)

    fwd = jax.jit(discriminator_forward)
    out = jax.block_until_ready(fwd(x_nhwc, params))
    ref = jax.block_until_ready(reference_forward(x_nhwc, params))

    assert out.shape == (B,), f"unexpected output shape {out.shape}"
    assert jnp.allclose(out, ref, atol=5e-3, rtol=5e-3), (out, ref)

    print("KERNEL_OK")
</pallas_src>

<mosaic_0001>
module attributes {stable_mosaic.version = 11 : i64} {
  func.func @_disc_fused_kernel(%arg0: i32, %arg1: memref<768x128xf32, #tpu.memory_space<vmem>>, %arg2: memref<128x768xf32, #tpu.memory_space<vmem>>, %arg3: memref<128x1xf32, #tpu.memory_space<vmem>>, %arg4: memref<16x128xf32, #tpu.memory_space<vmem>>, %arg5: memref<16x3xf32, #tpu.memory_space<vmem>>, %arg6: memref<32x256xf32, #tpu.memory_space<vmem>>, %arg7: memref<32x3xf32, #tpu.memory_space<vmem>>, %arg8: memref<32x1xf32, #tpu.memory_space<vmem>>, %arg9: memref<1x1xf32, #tpu.memory_space<vmem>>, %arg10: memref<1x128xf32, #tpu.memory_space<vmem>>, %arg11: memref<16x3200xf32, #tpu.memory_space<vmem>>, %arg12: memref<16x1xf32, #tpu.memory_space<vmem>>, %arg13: memref<16x1xf32, #tpu.memory_space<vmem>>) attributes {dimension_semantics = [#tpu.dimension_semantics<arbitrary>], iteration_bounds = array<i64: 25>, scalar_prefetch = 0 : i64, scratch_operands = 3 : i64, tpu.core_type = #tpu.core_type<tc>, window_params = [{transform_indices = @transform_0, window_bounds = array<i64: 768, 128>}, {pipeline_mode = #tpu.pipeline_mode<synchronous>, transform_indices = @transform_1, window_bounds = array<i64: 128, 768>}, {pipeline_mode = #tpu.pipeline_mode<synchronous>, transform_indices = @transform_2, window_bounds = array<i64: 128, 1>}, {pipeline_mode = #tpu.pipeline_mode<synchronous>, transform_indices = @transform_3, window_bounds = array<i64: 16, 128>}, {pipeline_mode = #tpu.pipeline_mode<synchronous>, transform_indices = @transform_4, window_bounds = array<i64: 16, 3>}, {pipeline_mode = #tpu.pipeline_mode<synchronous>, transform_indices = @transform_5, window_bounds = array<i64: 32, 256>}, {pipeline_mode = #tpu.pipeline_mode<synchronous>, transform_indices = @transform_6, window_bounds = array<i64: 32, 3>}, {pipeline_mode = #tpu.pipeline_mode<synchronous>, transform_indices = @transform_7, window_bounds = array<i64: 32, 1>}, {pipeline_mode = #tpu.pipeline_mode<synchronous>, transform_indices = @transform_8, window_bounds = array<i64: 1, 1>}, {pipeline_mode = #tpu.pipeline_mode<synchronous>, transform_indices = @transform_9, window_bounds = array<i64: 1, 128>}]} {
    %c0_i32 = arith.constant 0 : i32
    %0 = arith.cmpi eq, %arg0, %c0_i32 : i32
    %1 = arith.extui %0 : i1 to i32
    %c0_i32_0 = arith.constant 0 : i32
    %2 = arith.cmpi ne, %1, %c0_i32_0 : i32
    scf.if %2 {
      %cst_25 = arith.constant 0.000000e+00 : f32
      %44 = vector.broadcast %cst_25 : f32 to vector<16x1xf32>
      %c0_26 = arith.constant 0 : index
      %c0_27 = arith.constant 0 : index
      %45 = vector.load %arg12[%c0_26, %c0_27] : memref<16x1xf32, #tpu.memory_space<vmem>>, vector<16x1xf32>
      tpu.vector_store %arg12[%c0_26, %c0_27], %44 {strides = array<i32>} : memref<16x1xf32, #tpu.memory_space<vmem>>, vector<16x1xf32>,
      %cst_28 = arith.constant 0.000000e+00 : f32
      %46 = vector.broadcast %cst_28 : f32 to vector<16x1xf32>
      %c0_29 = arith.constant 0 : index
      %c0_30 = arith.constant 0 : index
      %47 = vector.load %arg13[%c0_29, %c0_30] : memref<16x1xf32, #tpu.memory_space<vmem>>, vector<16x1xf32>
      tpu.vector_store %arg13[%c0_29, %c0_30], %46 {strides = array<i32>} : memref<16x1xf32, #tpu.memory_space<vmem>>, vector<16x1xf32>,
    } else {
    }
    %3 = tpu.iota {dimensions = array<i32: 1>} : vector<1x128xi32>
    %c2_i32 = arith.constant 2 : i32
    %4 = vector.broadcast %c2_i32 : i32 to vector<1x128xi32>
    %5 = arith.cmpi slt, %3, %4 : vector<1x128xi32>
    %6 = arith.extui %5 : vector<1x128xi1> to vector<1x128xi32>
    %7 = arith.sitofp %6 : vector<1x128xi32> to vector<1x128xf32>
    %c0 = arith.constant 0 : index
    %c0_1 = arith.constant 0 : index
    %8 = vector.load %arg1[%c0, %c0_1] : memref<768x128xf32, #tpu.memory_space<vmem>>, vector<768x128xf32>
    %c0_2 = arith.constant 0 : index
    %c0_3 = arith.constant 0 : index
    %9 = vector.load %arg2[%c0_2, %c0_3] : memref<128x768xf32, #tpu.memory_space<vmem>>, vector<128x768xf32>
    %cst = arith.constant dense<0.000000e+00> : vector<128x128xf32>
    %10 = tpu.matmul %9, %8, %cst {dimension_numbers = #tpu.dot_dimension_numbers<[1], [0], [0], [1], [0, 0, 1, 1], [], []>} : vector<128x768xf32>, vector<768x128xf32>, vector<128x128xf32> -> vector<128x128xf32>
    %c0_4 = arith.constant 0 : index
    %c0_5 = arith.constant 0 : index
    %11 = vector.load %arg3[%c0_4, %c0_5] : memref<128x1xf32, #tpu.memory_space<vmem>>, vector<128x1xf32>
    %12 = vector.broadcast %11 : vector<128x1xf32> to vector<128x128xf32>
    %13 = arith.addf %10, %12 : vector<128x128xf32>
    %cst_6 = arith.constant 0.000000e+00 : f32
    %14 = vector.broadcast %cst_6 : f32 to vector<128x128xf32>
    %15 = arith.cmpf oge, %13, %14 : vector<128x128xf32>
    %cst_7 = arith.constant 2.000000e-01 : f32
    %16 = vector.broadcast %cst_7 : f32 to vector<128x128xf32>
    %17 = arith.mulf %16, %13 : vector<128x128xf32>
    %18 = arith.select %15, %13, %17 : vector<128x128xi1>, vector<128x128xf32>
    %c0_8 = arith.constant 0 : index
    %c0_9 = arith.constant 0 : index
    %19 = vector.load %arg4[%c0_8, %c0_9] : memref<16x128xf32, #tpu.memory_space<vmem>>, vector<16x128xf32>
    %cst_10 = arith.constant dense<0.000000e+00> : vector<16x128xf32>
    %20 = tpu.matmul %19, %18, %cst_10 {dimension_numbers = #tpu.dot_dimension_numbers<[1], [0], [0], [1], [0, 0, 1, 1], [], []>} : vector<16x128xf32>, vector<128x128xf32>, vector<16x128xf32> -> vector<16x128xf32>
    %c0_11 = arith.constant 0 : index
    %c0_12 = arith.constant 0 : index
    %21 = vector.load %arg5[%c0_11, %c0_12] : memref<16x3xf32, #tpu.memory_space<vmem>>, vector<16x1xf32>
    %22 = vector.broadcast %21 : vector<16x1xf32> to vector<16x128xf32>
    %23 = arith.addf %20, %22 : vector<16x128xf32>
    %c128_i32 = arith.constant 128 : i32
    %24 = arith.muli %arg0, %c128_i32 : i32
    %25 = tpu.assume_multiple %24, 128 : i32
    %c0_13 = arith.constant 0 : index
    %26 = arith.index_cast %25 : i32 to index
    %27 = vector.load %arg11[%c0_13, %26] : memref<16x3200xf32, #tpu.memory_space<vmem>>, vector<16x128xf32>
    tpu.vector_store %arg11[%c0_13, %26], %23 {strides = array<i32>} : memref<16x3200xf32, #tpu.memory_space<vmem>>, vector<16x128xf32>,
    %28 = vector.broadcast %7 : vector<1x128xf32> to vector<16x128xf32>
    %29 = arith.mulf %23, %28 : vector<16x128xf32>
    %c0_14 = arith.constant 0 : index
    %c0_15 = arith.constant 0 : index
    %30 = vector.load %arg12[%c0_14, %c0_15] : memref<16x1xf32, #tpu.memory_space<vmem>>, vector<16x1xf32>
    %cst_16 = arith.constant dense<0.000000e+00> : vector<16xf32>
    %31 = vector.multi_reduction <add>, %29, %cst_16 [1] : vector<16x128xf32> to vector<16xf32>
    %32 = vector.shape_cast %31 : vector<16xf32> to vector<16x1xf32>
    %33 = arith.addf %30, %32 : vector<16x1xf32>
    %c0_17 = arith.constant 0 : index
    %c0_18 = arith.constant 0 : index
    %34 = vector.load %arg12[%c0_17, %c0_18] : memref<16x1xf32, #tpu.memory_space<vmem>>, vector<16x1xf32>
    tpu.vector_store %arg12[%c0_17, %c0_18], %33 {strides = array<i32>} : memref<16x1xf32, #tpu.memory_space<vmem>>, vector<16x1xf32>,
    %c0_19 = arith.constant 0 : index
    %c0_20 = arith.constant 0 : index
    %35 = vector.load %arg13[%c0_19, %c0_20] : memref<16x1xf32, #tpu.memory_space<vmem>>, vector<16x1xf32>
    %36 = arith.mulf %29, %23 : vector<16x128xf32>
    %cst_21 = arith.constant dense<0.000000e+00> : vector<16xf32>
    %37 = vector.multi_reduction <add>, %36, %cst_21 [1] : vector<16x128xf32> to vector<16xf32>
    %38 = vector.shape_cast %37 : vector<16xf32> to vector<16x1xf32>
    %39 = arith.addf %35, %38 : vector<16x1xf32>
    %c0_22 = arith.constant 0 : index
    %c0_23 = arith.constant 0 : index
    %40 = vector.load %arg13[%c0_22, %c0_23] : memref<16x1xf32, #tpu.memory_space<vmem>>, vector<16x1xf32>
    tpu.vector_store %arg13[%c0_22, %c0_23], %39 {strides = array<i32>} : memref<16x1xf32, #tpu.memory_space<vmem>>, vector<16x1xf32>,
    %c24_i32 = arith.constant 24 : i32
    %41 = arith.cmpi eq, %arg0, %c24_i32 : i32
    %42 = arith.extui %41 : i1 to i32
    %c0_i32_24 = arith.constant 0 : i32
    %43 = arith.cmpi ne, %42, %c0_i32_24 : i32
    scf.if %43 {
      %c0_25 = arith.constant 0 : index
      %c0_26 = arith.constant 0 : index
      %44 = vector.load %arg12[%c0_25, %c0_26] : memref<16x1xf32, #tpu.memory_space<vmem>>, vector<16x1xf32>
      %cst_27 = arith.constant 2.000000e-02 : f32
      %45 = vector.broadcast %cst_27 : f32 to vector<16x1xf32>
      %46 = arith.mulf %44, %45 : vector<16x1xf32>
      %c0_28 = arith.constant 0 : index
      %c0_29 = arith.constant 0 : index
      %47 = vector.load %arg13[%c0_28, %c0_29] : memref<16x1xf32, #tpu.memory_space<vmem>>, vector<16x1xf32>
      %cst_30 = arith.constant 2.000000e-02 : f32
      %48 = vector.broadcast %cst_30 : f32 to vector<16x1xf32>
      %49 = arith.mulf %47, %48 : vector<16x1xf32>
      %50 = arith.mulf %46, %46 : vector<16x1xf32>
      %51 = arith.subf %49, %50 : vector<16x1xf32>
      %cst_31 = arith.constant 9.99999974E-6 : f32
      %52 = vector.broadcast %cst_31 : f32 to vector<16x1xf32>
      %53 = arith.addf %51, %52 : vector<16x1xf32>
      %54 = math.rsqrt %53 : vector<16x1xf32>
      %c0_32 = arith.constant 0 : index
      %c1 = arith.constant 1 : index
      %55 = vector.load %arg5[%c0_32, %c1] : memref<16x3xf32, #tpu.memory_space<vmem>>, vector<16x1xf32>
      %56 = arith.mulf %54, %55 : vector<16x1xf32>
      %c0_33 = arith.constant 0 : index
      %c2 = arith.constant 2 : index
      %57 = vector.load %arg5[%c0_33, %c2] : memref<16x3xf32, #tpu.memory_space<vmem>>, vector<16x1xf32>
      %58 = arith.mulf %46, %56 : vector<16x1xf32>
      %59 = arith.subf %57, %58 : vector<16x1xf32>
      %c0_34 = arith.constant 0 : index
      %c0_35 = arith.constant 0 : index
      %60 = vector.load %arg11[%c0_34, %c0_35] : memref<16x3200xf32, #tpu.memory_space<vmem>>, vector<16x3200xf32>
      %61 = vector.broadcast %56 : vector<16x1xf32> to vector<16x3200xf32>
      %62 = arith.mulf %60, %61 : vector<16x3200xf32>
      %63 = vector.broadcast %59 : vector<16x1xf32> to vector<16x3200xf32>
      %64 = arith.addf %62, %63 : vector<16x3200xf32>
      %cst_36 = arith.constant 0.000000e+00 : f32
      %65 = vector.broadcast %cst_36 : f32 to vector<16x3200xf32>
      %66 = arith.cmpf oge, %64, %65 : vector<16x3200xf32>
      %cst_37 = arith.constant 2.000000e-01 : f32
      %67 = vector.broadcast %cst_37 : f32 to vector<16x3200xf32>
      %68 = arith.mulf %67, %64 : vector<16x3200xf32>
      %69 = arith.select %66, %64, %68 : vector<16x3200xi1>, vector<16x3200xf32>
      %70 = vector.extract_strided_slice %69 {offsets = [0, 0], sizes = [16, 128], strides = [1, 1]} : vector<16x3200xf32> to vector<16x128xf32>
      %71 = vector.extract_strided_slice %69 {offsets = [0, 128], sizes = [16, 128], strides = [1, 1]} : vector<16x3200xf32> to vector<16x128xf32>
      %72 = vector.extract_strided_slice %69 {offsets = [0, 256], sizes = [16, 128], strides = [1, 1]} : vector<16x3200xf32> to vector<16x128xf32>
      %73 = vector.extract_strided_slice %69 {offsets = [0, 384], sizes = [16, 128], strides = [1, 1]} : vector<16x3200xf32> to vector<16x128xf32>
      %74 = vector.extract_strided_slice %69 {offsets = [0, 640], sizes = [16, 128], strides = [1, 1]} : vector<16x3200xf32> to vector<16x128xf32>
      %75 = vector.extract_strided_slice %69 {offsets = [0, 768], sizes = [16, 128], strides = [1, 1]} : vector<16x3200xf32> to vector<16x128xf32>
      %76 = vector.extract_strided_slice %69 {offsets = [0, 896], sizes = [16, 128], strides = [1, 1]} : vector<16x3200xf32> to vector<16x128xf32>
      %77 = vector.extract_strided_slice %69 {offsets = [0, 1024], sizes = [16, 128], strides = [1, 1]} : vector<16x3200xf32> to vector<16x128xf32>
      %78 = vector.extract_strided_slice %69 {offsets = [0, 1280], sizes = [16, 128], strides = [1, 1]} : vector<16x3200xf32> to vector<16x128xf32>
      %79 = vector.extract_strided_slice %69 {offsets = [0, 1408], sizes = [16, 128], strides = [1, 1]} : vector<16x3200xf32> to vector<16x128xf32>
      %80 = vector.extract_strided_slice %69 {offsets = [0, 1536], sizes = [16, 128], strides = [1, 1]} : vector<16x3200xf32> to vector<16x128xf32>
      %81 = vector.extract_strided_slice %69 {offsets = [0, 1664], sizes = [16, 128], strides = [1, 1]} : vector<16x3200xf32> to vector<16x128xf32>
      %82 = vector.extract_strided_slice %69 {offsets = [0, 1920], sizes = [16, 128], strides = [1, 1]} : vector<16x3200xf32> to vector<16x128xf32>
      %83 = vector.extract_strided_slice %69 {offsets = [0, 2048], sizes = [16, 128], strides = [1, 1]} : vector<16x3200xf32> to vector<16x128xf32>
      %84 = vector.extract_strided_slice %69 {offsets = [0, 2176], sizes = [16, 128], strides = [1, 1]} : vector<16x3200xf32> to vector<16x128xf32>
      %85 = vector.extract_strided_slice %69 {offsets = [0, 2304], sizes = [16, 128], strides = [1, 1]} : vector<16x3200xf32> to vector<16x128xf32>
      %86 = tpu.concatenate %70, %71, %72, %73, %74, %75, %76, %77, %78, %79, %80, %81, %82, %83, %84, %85 in 0 : vector<16x128xf32>, vector<16x128xf32>, vector<16x128xf32>, vector<16x128xf32>, vector<16x128xf32>, vector<16x128xf32>, vector<16x128xf32>, vector<16x128xf32>, vector<16x128xf32>, vector<16x128xf32>, vector<16x128xf32>, vector<16x128xf32>, vector<16x128xf32>, vector<16x128xf32>, vector<16x128xf32>, vector<16x128xf32> -> vector<256x128xf32>
      %c0_38 = arith.constant 0 : index
      %c0_39 = arith.constant 0 : index
      %87 = vector.load %arg6[%c0_38, %c0_39] : memref<32x256xf32, #tpu.memory_space<vmem>>, vector<32x256xf32>
      %cst_40 = arith.constant dense<0.000000e+00> : vector<32x128xf32>
      %88 = tpu.matmul %87, %86, %cst_40 {dimension_numbers = #tpu.dot_dimension_numbers<[1], [0], [0], [1], [0, 0, 1, 1], [], []>} : vector<32x256xf32>, vector<256x128xf32>, vector<32x128xf32> -> vector<32x128xf32>
      %c0_41 = arith.constant 0 : index
      %c0_42 = arith.constant 0 : index
      %89 = vector.load %arg7[%c0_41, %c0_42] : memref<32x3xf32, #tpu.memory_space<vmem>>, vector<32x1xf32>
      %90 = vector.broadcast %89 : vector<32x1xf32> to vector<32x128xf32>
      %91 = arith.addf %88, %90 : vector<32x128xf32>
      %92 = vector.broadcast %7 : vector<1x128xf32> to vector<32x128xf32>
      %93 = arith.mulf %91, %92 : vector<32x128xf32>
      %cst_43 = arith.constant dense<0.000000e+00> : vector<32xf32>
      %94 = vector.multi_reduction <add>, %93, %cst_43 [1] : vector<32x128xf32> to vector<32xf32>
      %95 = vector.shape_cast %94 : vector<32xf32> to vector<32x1xf32>
      %cst_44 = arith.constant 5.000000e-01 : f32
      %96 = vector.broadcast %cst_44 : f32 to vector<32x1xf32>
      %97 = arith.mulf %95, %96 : vector<32x1xf32>
      %98 = arith.mulf %93, %91 : vector<32x128xf32>
      %cst_45 = arith.constant dense<0.000000e+00> : vector<32xf32>
      %99 = vector.multi_reduction <add>, %98, %cst_45 [1] : vector<32x128xf32> to vector<32xf32>
      %100 = vector.shape_cast %99 : vector<32xf32> to vector<32x1xf32>
      %cst_46 = arith.constant 5.000000e-01 : f32
      %101 = vector.broadcast %cst_46 : f32 to vector<32x1xf32>
      %102 = arith.mulf %100, %101 : vector<32x1xf32>
      %103 = arith.mulf %97, %97 : vector<32x1xf32>
      %104 = arith.subf %102, %103 : vector<32x1xf32>
      %cst_47 = arith.constant 9.99999974E-6 : f32
      %105 = vector.broadcast %cst_47 : f32 to vector<32x1xf32>
      %106 = arith.addf %104, %105 : vector<32x1xf32>
      %107 = math.rsqrt %106 : vector<32x1xf32>
      %c0_48 = arith.constant 0 : index
      %c1_49 = arith.constant 1 : index
      %108 = vector.load %arg7[%c0_48, %c1_49] : memref<32x3xf32, #tpu.memory_space<vmem>>, vector<32x1xf32>
      %109 = arith.mulf %107, %108 : vector<32x1xf32>
      %c0_50 = arith.constant 0 : index
      %c2_51 = arith.constant 2 : index
      %110 = vector.load %arg7[%c0_50, %c2_51] : memref<32x3xf32, #tpu.memory_space<vmem>>, vector<32x1xf32>
      %111 = arith.mulf %97, %109 : vector<32x1xf32>
      %112 = arith.subf %110, %111 : vector<32x1xf32>
      %113 = vector.broadcast %109 : vector<32x1xf32> to vector<32x128xf32>
      %114 = arith.mulf %91, %113 : vector<32x128xf32>
      %115 = vector.broadcast %112 : vector<32x1xf32> to vector<32x128xf32>
      %116 = arith.addf %114, %115 : vector<32x128xf32>
      %cst_52 = arith.constant 0.000000e+00 : f32
      %117 = vector.broadcast %cst_52 : f32 to vector<32x128xf32>
      %118 = arith.cmpf oge, %116, %117 : vector<32x128xf32>
      %cst_53 = arith.constant 2.000000e-01 : f32
      %119 = vector.broadcast %cst_53 : f32 to vector<32x128xf32>
      %120 = arith.mulf %119, %116 : vector<32x128xf32>
      %121 = arith.select %118, %116, %120 : vector<32x128xi1>, vector<32x128xf32>
      %c0_54 = arith.constant 0 : index
      %c0_55 = arith.constant 0 : index
      %122 = vector.load %arg8[%c0_54, %c0_55] : memref<32x1xf32, #tpu.memory_space<vmem>>, vector<32x1xf32>
      %123 = vector.broadcast %122 : vector<32x1xf32> to vector<32x128xf32>
      %124 = arith.mulf %121, %123 : vector<32x128xf32>
      %cst_56 = arith.constant dense<0.000000e+00> : vector<128xf32>
      %125 = vector.multi_reduction <add>, %124, %cst_56 [0] : vector<32x128xf32> to vector<128xf32>
      %126 = vector.shape_cast %125 : vector<128xf32> to vector<1x128xf32>
      %c0_57 = arith.constant 0 : index
      %c0_58 = arith.constant 0 : index
      %127 = vector.load %arg9[%c0_57, %c0_58] : memref<1x1xf32, #tpu.memory_space<vmem>>, vector<1x1xf32>
      %128 = vector.broadcast %127 : vector<1x1xf32> to vector<1x128xf32>
      %129 = arith.addf %126, %128 : vector<1x128xf32>
      %130 = math.absf %129 : vector<1x128xf32>
      %cst_59 = arith.constant 0.000000e+00 : f32
      %131 = vector.broadcast %cst_59 : f32 to vector<1x128xf32>
      %132 = arith.subf %131, %130 : vector<1x128xf32>
      %133 = math.exp %132 : vector<1x128xf32>
      %cst_60 = arith.constant 1.000000e+00 : f32
      %134 = vector.broadcast %cst_60 : f32 to vector<1x128xf32>
      %135 = arith.addf %134, %133 : vector<1x128xf32>
      %cst_61 = arith.constant 1.000000e+00 : f32
      %136 = vector.broadcast %cst_61 : f32 to vector<1x128xf32>
      %137 = arith.divf %136, %135 : vector<1x128xf32>
      %cst_62 = arith.constant 0.000000e+00 : f32
      %138 = vector.broadcast %cst_62 : f32 to vector<1x128xf32>
      %139 = arith.cmpf oge, %129, %138 : vector<1x128xf32>
      %140 = arith.mulf %133, %137 : vector<1x128xf32>
      %141 = arith.select %139, %137, %140 : vector<1x128xi1>, vector<1x128xf32>
      %c0_63 = arith.constant 0 : index
      %c0_64 = arith.constant 0 : index
      %142 = vector.load %arg10[%c0_63, %c0_64] : memref<1x128xf32, #tpu.memory_space<vmem>>, vector<1x128xf32>
      tpu.vector_store %arg10[%c0_63, %c0_64], %141 {strides = array<i32>} : memref<1x128xf32, #tpu.memory_space<vmem>>, vector<1x128xf32>,
    } else {
    }
    return
  }
  func.func @transform_0(%arg0: i32) -> (i32, i32) {
    %c0_i32 = arith.constant 0 : i32
    %c0_i32_0 = arith.constant 0 : i32
    return %c0_i32, %arg0 : i32, i32
  }
  func.func @transform_1(%arg0: i32) -> (i32, i32) {
    %c0_i32 = arith.constant 0 : i32
    %c0_i32_0 = arith.constant 0 : i32
    %c0_i32_1 = arith.constant 0 : i32
    return %c0_i32, %c0_i32_0 : i32, i32
  }
  func.func @transform_2(%arg0: i32) -> (i32, i32) {
    %c0_i32 = arith.constant 0 : i32
    %c0_i32_0 = arith.constant 0 : i32
    %c0_i32_1 = arith.constant 0 : i32
    return %c0_i32, %c0_i32_0 : i32, i32
  }
  func.func @transform_3(%arg0: i32) -> (i32, i32) {
    %c0_i32 = arith.constant 0 : i32
    %c0_i32_0 = arith.constant 0 : i32
    %c0_i32_1 = arith.constant 0 : i32
    return %c0_i32, %c0_i32_0 : i32, i32
  }
  func.func @transform_4(%arg0: i32) -> (i32, i32) {
    %c0_i32 = arith.constant 0 : i32
    %c0_i32_0 = arith.constant 0 : i32
    %c0_i32_1 = arith.constant 0 : i32
    return %c0_i32, %c0_i32_0 : i32, i32
  }
  func.func @transform_5(%arg0: i32) -> (i32, i32) {
    %c0_i32 = arith.constant 0 : i32
    %c0_i32_0 = arith.constant 0 : i32
    %c0_i32_1 = arith.constant 0 : i32
    return %c0_i32, %c0_i32_0 : i32, i32
  }
  func.func @transform_6(%arg0: i32) -> (i32, i32) {
    %c0_i32 = arith.constant 0 : i32
    %c0_i32_0 = arith.constant 0 : i32
    %c0_i32_1 = arith.constant 0 : i32
    return %c0_i32, %c0_i32_0 : i32, i32
  }
  func.func @transform_7(%arg0: i32) -> (i32, i32) {
    %c0_i32 = arith.constant 0 : i32
    %c0_i32_0 = arith.constant 0 : i32
    %c0_i32_1 = arith.constant 0 : i32
    return %c0_i32, %c0_i32_0 : i32, i32
  }
  func.func @transform_8(%arg0: i32) -> (i32, i32) {
    %c0_i32 = arith.constant 0 : i32
    %c0_i32_0 = arith.constant 0 : i32
    %c0_i32_1 = arith.constant 0 : i32
    return %c0_i32, %c0_i32_0 : i32, i32
  }
  func.func @transform_9(%arg0: i32) -> (i32, i32) {
    %c0_i32 = arith.constant 0 : i32
    %c0_i32_0 = arith.constant 0 : i32
    %c0_i32_1 = arith.constant 0 : i32
    return %c0_i32, %c0_i32_0 : i32, i32
  }
}

</mosaic_0001>

<bundles_post_ra>
// kernel: discriminator_forward.1
= control target key start
LH: loop header
LB: loop body
LE: loop exit
PB: predicated region body
PF: predicated region fallthrough
CT: control target
= control target key end

     0   :  { %s3773_s0 = inlined_call_operand.hbm [shape: f32[768,3200], index: 0, kind: input, shape index: {}]   ;;  %s3774_s1 = inlined_call_operand.hbm [shape: f32[128,768], index: 1, kind: input, shape index: {}]   ;;  %s3775_s2 = inlined_call_operand.hbm [shape: f32[128,1], index: 2, kind: input, shape index: {}]   ;;  %s3776_s3 = inlined_call_operand.hbm [shape: f32[16,128], index: 3, kind: input, shape index: {}]   ;;  %s3777_s4 = inlined_call_operand.hbm [shape: f32[16,3], index: 4, kind: input, shape index: {}]   ;;  %s3778_s5 = inlined_call_operand.hbm [shape: f32[32,256], index: 5, kind: input, shape index: {}]   ;;  %s3779_s6 = inlined_call_operand.hbm [shape: f32[32,3], index: 6, kind: input, shape index: {}]   ;;  %s3780_s7 = inlined_call_operand.hbm [shape: f32[32,1], index: 7, kind: input, shape index: {}]   ;;  %s3781_s8 = inlined_call_operand.<no memory space> [shape: f32[1,1], index: 8, kind: input, shape index: {}]   ;;  %s3782_s9 = inlined_call_operand.hbm [shape: f32[1,128], index: 9, kind: output, shape index: {}]  }
   0x1   :  { %3789 = sst [smem:[#allocation27_spill]] %s3774_s1  ;;  %v14_v0 = vstv %s3781_s8 }
   0x2   :  { %3790 = sst [smem:[#allocation28_spill]] %s3776_s3  ;;  %15 = vst [vmem:[#allocation5] sm:$0x1] %v14_v0 }
   0x3   :  { %16 = vsyncpa [#allocation7], 0 }
   0x4   :  { %18 = vsyncpa [#allocation7 + $0x1], 0 }
   0x5   :  { %19 = vsyncpa [#allocation10], 0 }
   0x6   :  { %20 = vsyncpa [#allocation13], 0 }
   0x7   :  { %21 = vsyncpa [#allocation16], 0 }
   0x8   :  { %22 = vsyncpa [#allocation19], 0 }
   0x9   :  { %23 = vsyncpa [#allocation8], 0  ;;  %s3151_s11 = smov 0   ;;  %s3153_s12 = smov 0  }
   0xa   :  { %s3155_s13 = smov 0   ;;  %s3157_s14 = smov 0  }
   0xb LB: > { %s3073_s8 = smov [#allocation9]   ;;  %s3172_s16 = sadd.s32 4294967295, %s3071_s14   ;;  %s3071_s14 = sphi %s3157_s14, %s3814_s14   ;;  %s3067_s13 = sphi %s3155_s13, %s3813_s13   ;;  %s3063_s12 = sphi %s3153_s12, %s3812_s12   ;;  %s3059_s11 = sphi %s3151_s11, %s3811_s11  }
   0xc   : > { %s261_s15 = sshll.u32 %s3073_s8, 4  ;;  %p2043_p0 = scmp.ge.s32.totalorder %s3071_s14, 1  ;;  %s3178_s15 = int_to_ptr.vmem [resolvable:$true] %s261_s15 }
   0xd   : > { %p3783_p1 = scmp.eq.s32.totalorder %s3172_s16, 0  ;;  %p249_p2 = scmp.lt.s32.totalorder %s3071_s14, 26 }
   0xe   : > { %s3074_s19 = smov [#allocation12]   ;;  %s3075_s21 = smov [#allocation15]  }
   0xf   : > { %p3180_p4 = pnand %p2043_p0, %p249_p2  ;;  %s287_s20 = sshll.u32 %s3074_s19, 4  ;;  %s3192_s20 = int_to_ptr.vmem [resolvable:$true] %s287_s20 }
  0x10   : > { %s3194_s22 = sshll.u32 %s3075_s21, 4  ;;  %s3793_s1 = sld [smem:[#allocation27_spill]]  ;;  %s314_s22 = int_to_ptr.vmem [resolvable:$true] %s3194_s22 }
  0x11   : > { %s3791_s17 = scalar_select %p3180_p4, 1, 0 }
  0x12   : > { %p2635_p5 = pneg %p3180_p4 }
  0x14   : > { %p3188_p6 = pnand %p2635_p5, %p3783_p1 }
  0x16   : > { %s2765_s25 = scalar_lea.hbm %s3793_s1, 12288  ;;  %p3204_p8 = pneg %p3188_p6 }
  0x17   : > { %p2766_p7 = scmp.ne.s32.totalorder %s3793_s1, %s2765_s25  ;;  %p2772_p11 = scmp.lt.u32.totalorder %s2765_s25, %s3793_s1 }
  0x19   : > { %p2768_p9 = pnand %p3204_p8, %p2766_p7 }
  0x1b   : > { %p2769_p10 = pneg %p2768_p9 }
  0x1d   : > { %p2774_p12 = pnand %p2772_p11, %p2769_p10 }
  0x1f   : > { %2777 = shalt.err (!%p2774_p12)
}
  0x20   : > { %s2778_s10 = scalar_lea.vmem %s3178_s15, 12288  ;;  %p2786_p5 = scmp.lt.s32.totalorder %s3178_s15, %s3178_s15 }
  0x21   : > { %p2779_p13 = scmp.ne.s32.totalorder %s3178_s15, %s2778_s10  ;;  %p2787_p3 = scmp.lt.s32.totalorder %s2778_s10, %s2778_s10 }
  0x23   : > { %p2781_p0 = pnand %p2779_p13, %p3204_p8  ;;  %p2788_p7 = por %p2787_p3, %p2786_p5 }
  0x25   : > { %p2782_p2 = pneg %p2781_p0 }
  0x27   : > { %p2789_p9 = pnand %p2788_p7, %p2782_p2 }
  0x29   : > { %2792 = shalt.err (!%p2789_p9)
}
  0x2a   : > { %s3076_s8 = smov 768   ;;  %s3077_s19 = smov 48  }
  0x2b   : > { %2638 = dma.hbm_to_vmem [thread:$0]  (!%p3188_p6), %s3793_s1, 12288, %s3178_s15, [#allocation10], %s3076_s8, %s3076_s8, %s3077_s19  }
  0x2c   : > { %s3795_s3 = sld [smem:[#allocation28_spill]] }
  0x32   : > { %s2793_s26 = scalar_lea.hbm %s3795_s3, 256 }
  0x33   : > { %p2794_p3 = scmp.ne.s32.totalorder %s3795_s3, %s2793_s26  ;;  %p2800_p12 = scmp.lt.u32.totalorder %s2793_s26, %s3795_s3 }
  0x35   : > { %p2796_p10 = pnand %p2794_p3, %p3204_p8 }
  0x37   : > { %p2797_p11 = pneg %p2796_p10 }
  0x39   : > { %p2802_p13 = pnand %p2800_p12, %p2797_p11 }
  0x3b   : > { %2805 = shalt.err (!%p2802_p13)
}
  0x3c   : > { %s2806_s15 = scalar_lea.vmem %s3192_s20, 256  ;;  %p2814_p7 = scmp.lt.s32.totalorder %s3192_s20, %s3192_s20 }
  0x3d   : > { %p2807_p0 = scmp.ne.s32.totalorder %s3192_s20, %s2806_s15  ;;  %p2815_p9 = scmp.lt.s32.totalorder %s2806_s15, %s2806_s15 }
  0x3f   : > { %p2809_p2 = pnand %p2807_p0, %p3204_p8  ;;  %p2816_p3 = por %p2815_p9, %p2814_p7 }
  0x41   : > { %p2810_p5 = pneg %p2809_p2 }
  0x43   : > { %p2817_p10 = pnand %p2816_p3, %p2810_p5 }
  0x45   : > { %2820 = shalt.err (!%p2817_p10)
}
  0x46   : > { %s3785_s8 = smov 128   ;;  %s3787_s19 = smov 8  }
  0x47   : > { %2644 = dma.hbm_to_vmem [thread:$0]  (!%p3188_p6), %s3795_s3, 256, %s3192_s20, [#allocation13], %s3785_s8, %s3785_s8, %s3787_s19  }
  0x48   : > { %s2821_s26 = scalar_lea.hbm %s3778_s5, 1024 }
  0x49   : > { %p2822_p11 = scmp.ne.s32.totalorder %s3778_s5, %s2821_s26  ;;  %p2828_p0 = scmp.lt.u32.totalorder %s2821_s26, %s3778_s5 }
  0x4b   : > { %p2824_p12 = pnand %p2822_p11, %p3204_p8 }
  0x4d   : > { %p2825_p13 = pneg %p2824_p12 }
  0x4f   : > { %p2830_p2 = pnand %p2828_p0, %p2825_p13 }
  0x51   : > { %2833 = shalt.err (!%p2830_p2)
}
  0x52   : > { %s2834_s15 = scalar_lea.vmem %s314_s22, 1024  ;;  %p2842_p3 = scmp.lt.s32.totalorder %s314_s22, %s314_s22 }
  0x53   : > { %p2835_p5 = scmp.ne.s32.totalorder %s314_s22, %s2834_s15  ;;  %p2843_p10 = scmp.lt.s32.totalorder %s2834_s15, %s2834_s15 }
  0x55   : > { %p2837_p7 = pnand %p2835_p5, %p3204_p8  ;;  %p2844_p1 = por %p2843_p10, %p2842_p3 }
  0x57   : > { %p2838_p9 = pneg %p2837_p7 }
  0x59   : > { %p2845_p4 = pnand %p2844_p1, %p2838_p9 }
  0x5b   : > { %2848 = shalt.err (!%p2845_p4)
}
  0x5c   : > { %s3080_s20 = smov 256   ;;  %s3081_s21 = smov 16  }
  0x5d   : > { %2650 = dma.hbm_to_vmem [thread:$0]  (!%p3188_p6), %s3778_s5, 1024, %s314_s22, [#allocation16], %s3080_s20, %s3080_s20, %s3081_s21  }
  0x5e   : > { %s3082_s25 = smov [#allocation11]   ;;  %s3083_s27 = smov [#allocation14]  }
  0x5f   : > { %s274_s26 = sshll.u32 %s3082_s25, 4  ;;  %s300_s29 = sshll.u32 %s3083_s27, 4  ;;  %s275_s26 = int_to_ptr.vmem [resolvable:$true] %s274_s26  ;;  %s301_s29 = int_to_ptr.vmem [resolvable:$true] %s300_s29 }
  0x60   : > { %s2849_s15 = scalar_lea.hbm %s3775_s2, 2048 }
  0x61   : > { %p2850_p1 = scmp.ne.s32.totalorder %s3775_s2, %s2849_s15  ;;  %p2856_p12 = scmp.lt.u32.totalorder %s2849_s15, %s3775_s2 }
  0x63   : > { %p2852_p4 = pnand %p2850_p1, %p3204_p8 }
  0x65   : > { %p2853_p11 = pneg %p2852_p4 }
  0x67   : > { %p2858_p13 = pnand %p2856_p12, %p2853_p11 }
  0x69   : > { %2861 = shalt.err (!%p2858_p13)
}
  0x6a   : > { %s2862_s22 = scalar_lea.vmem %s275_s26, 2048  ;;  %p2870_p7 = scmp.lt.s32.totalorder %s275_s26, %s275_s26 }
  0x6b   : > { %p2863_p0 = scmp.ne.s32.totalorder %s275_s26, %s2862_s22  ;;  %p2871_p9 = scmp.lt.s32.totalorder %s2862_s22, %s2862_s22 }
  0x6d   : > { %p2865_p2 = pnand %p2863_p0, %p3204_p8  ;;  %p2872_p3 = por %p2871_p9, %p2870_p7 }
  0x6f   : > { %p2866_p5 = pneg %p2865_p2 }
  0x71   : > { %p2873_p10 = pnand %p2872_p3, %p2866_p5 }
  0x73   : > { %2876 = shalt.err (!%p2873_p10)
}
  0x74   : > { %s3796_s8 = smov 8   ;;  %s3797_s19 = smov 128  }
  0x75   : > { %2641 = dma.hbm_to_vmem [thread:$0]  (!%p3188_p6), %s3775_s2, 2048, %s275_s26, [#allocation10], %s3797_s19, %s3797_s19, %s3796_s8  }
  0x76   : > { %s2877_s23 = scalar_lea.hbm %s3777_s4, 256 }
  0x77   : > { %p2878_p1 = scmp.ne.s32.totalorder %s3777_s4, %s2877_s23  ;;  %p2884_p12 = scmp.lt.u32.totalorder %s2877_s23, %s3777_s4 }
  0x79   : > { %p2880_p4 = pnand %p2878_p1, %p3204_p8 }
  0x7b   : > { %p2881_p11 = pneg %p2880_p4 }
  0x7d   : > { %p2886_p13 = pnand %p2884_p12, %p2881_p11 }
  0x7f   : > { %2889 = shalt.err (!%p2886_p13)
}
  0x80   : > { %s2890_s10 = scalar_lea.vmem %s301_s29, 256  ;;  %p2898_p7 = scmp.lt.s32.totalorder %s301_s29, %s301_s29 }
  0x81   : > { %p2891_p0 = scmp.ne.s32.totalorder %s301_s29, %s2890_s10  ;;  %p2899_p9 = scmp.lt.s32.totalorder %s2890_s10, %s2890_s10 }
  0x83   : > { %p2893_p2 = pnand %p2891_p0, %p3204_p8  ;;  %p2900_p3 = por %p2899_p9, %p2898_p7 }
  0x85   : > { %p2894_p5 = pneg %p2893_p2 }
  0x87   : > { %p2901_p10 = pnand %p2900_p3, %p2894_p5 }
  0x89   : > { %2904 = shalt.err (!%p2901_p10)
}
  0x8a   : > { %2647 = dma.hbm_to_vmem [thread:$0]  (!%p3188_p6), %s3777_s4, 256, %s301_s29, [#allocation13], %s3797_s19, %s3797_s19, %s3796_s8  }
  0x8b   : > { %s3084_s22 = smov [#allocation17]   ;;  %s3085_s3 = smov [#allocation18]  }
  0x8c   : > { %s326_s1 = sshll.u32 %s3084_s22, 4  ;;  %s339_s20 = sshll.u32 %s3085_s3, 4  ;;  %s327_s1 = int_to_ptr.vmem [resolvable:$true] %s326_s1  ;;  %s340_s20 = int_to_ptr.vmem [resolvable:$true] %s339_s20 }
  0x8d   : > { %s2905_s24 = scalar_lea.hbm %s3779_s6, 512 }
  0x8e   : > { %p2906_p1 = scmp.ne.s32.totalorder %s3779_s6, %s2905_s24  ;;  %p2912_p12 = scmp.lt.u32.totalorder %s2905_s24, %s3779_s6 }
  0x90   : > { %p2908_p4 = pnand %p2906_p1, %p3204_p8 }
  0x92   : > { %p2909_p11 = pneg %p2908_p4 }
  0x94   : > { %p2914_p13 = pnand %p2912_p12, %p2909_p11 }
  0x96   : > { %2917 = shalt.err (!%p2914_p13)
}
  0x97   : > { %s2918_s29 = scalar_lea.vmem %s327_s1, 512  ;;  %p2926_p7 = scmp.lt.s32.totalorder %s327_s1, %s327_s1 }
  0x98   : > { %p2919_p0 = scmp.ne.s32.totalorder %s327_s1, %s2918_s29  ;;  %p2927_p9 = scmp.lt.s32.totalorder %s2918_s29, %s2918_s29 }
  0x9a   : > { %p2921_p2 = pnand %p2919_p0, %p3204_p8  ;;  %p2928_p3 = por %p2927_p9, %p2926_p7 }
  0x9c   : > { %p2922_p5 = pneg %p2921_p2 }
  0x9e   : > { %p2929_p10 = pnand %p2928_p3, %p2922_p5 }
  0xa0   : > { %2932 = shalt.err (!%p2929_p10)
}
  0xa1   : > { %2653 = dma.hbm_to_vmem [thread:$0]  (!%p3188_p6), %s3779_s6, 512, %s327_s1, [#allocation16], %s3797_s19, %s3797_s19, %s3796_s8  }
  0xa2   : > { %s2933_s21 = scalar_lea.hbm %s3780_s7, 512 }
  0xa3   : > { %p2934_p1 = scmp.ne.s32.totalorder %s3780_s7, %s2933_s21  ;;  %p2940_p12 = scmp.lt.u32.totalorder %s2933_s21, %s3780_s7 }
  0xa5   : > { %p2936_p4 = pnand %p2934_p1, %p3204_p8 }
  0xa7   : > { %p2937_p11 = pneg %p2936_p4 }
  0xa9   : > { %p2942_p13 = pnand %p2940_p12, %p2937_p11 }
  0xab   : > { %2945 = shalt.err (!%p2942_p13)
}
  0xac   : > { %s2946_s30 = scalar_lea.vmem %s340_s20, 512  ;;  %p2954_p7 = scmp.lt.s32.totalorder %s340_s20, %s340_s20 }
  0xad   : > { %p2947_p0 = scmp.ne.s32.totalorder %s340_s20, %s2946_s30  ;;  %p2955_p9 = scmp.lt.s32.totalorder %s2946_s30, %s2946_s30 }
  0xaf   : > { %p2949_p2 = pnand %p2947_p0, %p3204_p8  ;;  %p2956_p3 = por %p2955_p9, %p2954_p7 }
  0xb1   : > { %p2950_p5 = pneg %p2949_p2 }
  0xb3   : > { %p2957_p10 = pnand %p2956_p3, %p2950_p5 }
  0xb5   : > { %2960 = shalt.err (!%p2957_p10)
}
  0xb6   : > { %2656 = dma.hbm_to_vmem [thread:$0]  (!%p3188_p6), %s3780_s7, 512, %s340_s20, [#allocation19], %s3797_s19, %s3797_s19, %s3796_s8  }
  0xb7   : > { %s3355_s18 = sadd.s32 1, %s3071_s14   ;;  %s36_s29 = sadd.s32 1, %s3067_s13 }
  0xb8   : > { %s33_s28 = ssub.s32 %s3071_s14, %s3355_s18  ;;  %p43_p1 = scmp.ne.s32.totalorder %s3067_s13, %s3063_s12 }
  0xb9   : > { %p34_p8 = scmp.eq.s32.totalorder %s33_s28, 0  ;;  %p44_p4 = scmp.eq.s32.totalorder %s3071_s14, 0 }
  0xba   : > { %p49_p11 = scmp.ne.s32.totalorder %s3063_s12, %s3059_s11  ;;  %p3798_p13 = scmp.eq.s32.totalorder %s3172_s16, 0 }
  0xbb   : > { %s3366_s26 = scalar_select %p34_p8, %s3067_s13, %s36_s29  }
  0xbc   : > { %p45_p12 = por %p44_p4, %p43_p1  ;;  %p3370_p0 = por %p3798_p13, %p49_p11 }
  0xbd   : > { %p2668_p2 = scmp.lt.s32.totalorder %s3071_s14, 25  ;;  %s356_s22 = sand.u32 1, %s3067_s13  }
  0xbe   : > { %s2599_s20 = smul.u32 768, %s356_s22  ;;  %s2052_s3 = sshll.u32 %s3071_s14, 7 }
  0xbf   : > { %p3377_p6 = pnand %p2668_p2, %p45_p12  ;;  %s3384_s11 = scalar_lea.hbm %s3773_s0, %s2052_s3 }
  0xc0   : > { %s360_s25 = scalar_lea.vmem [#allocation6], %s2599_s20  ;;  %s3388_s14 = scalar_lea.sflag [#allocation7], %s356_s22 }
  0xc1   : > { %s366_s27 = sshll.u32 %s360_s25, 4  ;;  %s2961_s30 = scalar_lea.hbm %s3384_s11, 12288  ;;  %s3386_s27 = int_to_ptr.vmem [resolvable:$true] %s366_s27 }
  0xc2   : > { %p2962_p5 = scmp.ne.s32.totalorder %s3384_s11, %s2961_s30  ;;  %p2963_p7 = pneg %p3377_p6 }
  0xc3   : > { %s2966_s28 = scalar_lea.hbm %s3773_s0, 307200  ;;  %p2967_p10 = scmp.lt.u32.totalorder %s3384_s11, %s3773_s0 }
  0xc4   : > { %p2964_p9 = pnand %p2963_p7, %p2962_p5  ;;  %p2968_p8 = scmp.lt.u32.totalorder %s2966_s28, %s2961_s30 }
  0xc5   : > { %p2970_p4 = scmp.lt.u32.totalorder %s2961_s30, %s3384_s11 }
  0xc6   : > { %p2965_p3 = pneg %p2964_p9  ;;  %p2969_p1 = por %p2968_p8, %p2967_p10 }
  0xc8   : > { %p2971_p11 = por %p2970_p4, %p2969_p1 }
  0xca   : > { %p2972_p12 = pnand %p2971_p11, %p2965_p3 }
  0xcc   : > { %2975 = shalt.err (!%p2972_p12)
}
  0xcd   : > { %s2976_s22 = scalar_lea.vmem %s3386_s27, 12288  ;;  %s3086_s20 = smov [#allocation6]  }
  0xce   : > { %p2977_p13 = scmp.ne.s32.totalorder %s3386_s27, %s2976_s22  ;;  %s2981_s23 = sshll.u32 %s3086_s20, 4  ;;  %s2982_s23 = int_to_ptr.vmem [resolvable:$false] %s2981_s23 }
  0xcf   : > { %s2983_s24 = scalar_lea.vmem %s2982_s23, 24576  ;;  %p2984_p9 = scmp.lt.s32.totalorder %s3386_s27, %s2982_s23 }
  0xd0   : > { %p2979_p2 = pnand %p2977_p13, %p2963_p7  ;;  %p2985_p10 = scmp.lt.s32.totalorder %s2983_s24, %s2976_s22 }
  0xd2   : > { %p2980_p5 = pneg %p2979_p2  ;;  %p2986_p8 = por %p2985_p10, %p2984_p9 }
  0xd4   : > { %p2987_p1 = pnand %p2986_p8, %p2980_p5 }
  0xd6   : > { %2990 = shalt.err (!%p2987_p1)
}
  0xd7   : > { %s3087_s25 = smov 3200   ;;  %p3801_p7 = scmp.ne.s32.totalorder %s3791_s17, 0 }
  0xd8   : > { %2660 = dma.hbm_to_vmem [thread:$0]  (!%p3377_p6), %s3384_s11, 12288, %s3386_s27, %s3388_s14, %s3087_s25, %s3797_s19, %s3796_s8  }
  0xd9   : > { %378 = sbr.rel (%p3801_p7) target bundleno = 2009 (0x7d9), region = 56  ;;  %s380_s30 = sand.u32 (!%p3801_p7), 1, %s3063_s12  }
  0xda   : > { %s2600_s1 = smul.u32 (!%p3801_p7), 768, %s380_s30  ;;  %s381_s10 = scalar_lea.sflag (!%p3801_p7), [#allocation7], %s380_s30 }
  0xdc   : > { %s3421_s28 = scalar_lea.vmem (!%p3801_p7), [#allocation6], %s2600_s1 }
  0xe0   : > { %3034 = dma.done.wait (%p3370_p0), %s381_s10, 12288  }
  0xe1   : > { %3036 = vsyncadd (%p3370_p0), %s381_s10, 4294955008  ;;  %p3802_p3 = scmp.eq.s32.totalorder %s3172_s16, 0 }
  0xe3   : > { %3038 = dma.done.wait (%p3802_p3), [#allocation10], 14336   ;;  %p3803_p6 = pmov %p3802_p3 }
  0xe4   : > { %p3804_p4 = pmov %p3802_p3 }
  0xe5   : > { %3040 = vsyncadd (%p3803_p6), [#allocation10], 4294952960 }
  0xe6   : > { %3042 = dma.done.wait (%p3804_p4), [#allocation13], 512   ;;  %p3805_p11 = pmov %p3802_p3 }
  0xe7   : > { %p3806_p12 = pmov %p3802_p3 }
  0xe8   : > { %3044 = vsyncadd (%p3805_p11), [#allocation13], 4294966784 }
  0xe9   : > { %3046 = dma.done.wait (%p3806_p12), [#allocation16], 1536   ;;  %p3807_p13 = pmov %p3802_p3 }
  0xea   : > { %p3808_p0 = pmov %p3802_p3 }
  0xeb   : > { %3048 = vsyncadd (%p3807_p13), [#allocation16], 4294965760 }
  0xec   : > { %3050 = dma.done.wait (%p3808_p0), [#allocation19], 512   ;;  %p3809_p2 = pmov %p3808_p0 }
  0xed   : > { %p3810_p5 = scmp.ne.s32.totalorder %s3172_s16, 0 }
  0xee   : > { %3052 = vsyncadd (%p3809_p2), [#allocation19], 4294966784  ;;  %vm446_vm0 = vcmask (!%p3810_p5), 7168   ;;  %v3088_v1 = vmov (!%p3810_p5), 0.0  }
  0xef   : > { %445 = sbr.rel (%p3810_p5) target bundleno = 246 (0xf6), region = 92  ;;  %447 = vst.msk [vmem:[#allocation3] sm:$0xff] (!%p3810_p5), %vm446_vm0, %v3088_v1  ;;  %448 = vst.msk [vmem:[#allocation3 + $0x8] sm:$0xff] (!%p3810_p5), %vm446_vm0, %v3088_v1 }
  0xf0   : > { %449 = vst.msk [vmem:[#allocation4] sm:$0xff] (!%p3810_p5), %vm446_vm0, %v3088_v1  ;;  %450 = vst.msk [vmem:[#allocation4 + $0x8] sm:$0xff] (!%p3810_p5), %vm446_vm0, %v3088_v1 }
  0xf6 PF: > { %v472_v2 = vld [vmem:[%s3421_s28 + $0x80] sm:$0xff]  ;;  %v473_v3 = vld [vmem:[%s3421_s28 + $0x88] sm:$0xff]  ;;  %v474_v7 = vld [vmem:[%s3421_s28 + $0x90] sm:$0xff]  ;;  %v3089_v9 = vmov 0   ;;  %s2063_s17 = sshll.u32 %s3172_s16, 7  ;;  %p2065_p9 = scmp.ne.s32.totalorder %s3172_s16, 24 }
  0xf7   : > { %v456_v4 = vld [vmem:[%s3421_s28] sm:$0xff]  ;;  %v2407_v5 = vpack.c.bf16 %v473_v3, %v472_v2  ;;  %v457_v6 = vld [vmem:[%s3421_s28 + $0x8] sm:$0xff]  ;;  %v475_v8 = vld [vmem:[%s3421_s28 + $0x98] sm:$0xff]  ;;  %2734 = vset.pattern.permute.xlu0 %v3089_v9  ;;  %2735 = vset.pattern.permute.xlu1 %v3089_v9  ;;  %s1317_s8 = sshra.s32 %s2063_s17, 7  ;;  %s3091_s21 = smov (!%p2065_p9), 127  }
  0xf8   : > { %v2409_v10 = vpack.c.bf16 %v457_v6, %v456_v4  ;;  %v2411_v11 = vpack.c.bf16 %v475_v8, %v474_v7  ;;  %v458_v12 = vld [vmem:[%s3421_s28 + $0x10] sm:$0xff]  ;;  %v459_v13 = vld [vmem:[%s3421_s28 + $0x18] sm:$0xff]  ;;  %v476_v14 = vld [vmem:[%s3421_s28 + $0xa0] sm:$0xff]  ;;  %s2064_s19 = sshll.u32 %s1317_s8, 3  ;;  %s3093_s11 = smov (!%p2065_p9), 2  }
  0xf9   : > { %2567 = vmatprep.subr.bf16.mxu1 %v2407_v5  ;;  %2408 = vmatprep.subr.bf16.mxu0 %v2407_v5  ;;  %v477_v15 = vld [vmem:[%s3421_s28 + $0xa8] sm:$0xff]  ;;  %v2413_v16 = vpack.c.bf16 %v459_v13, %v458_v12  ;;  %v460_v18 = vld [vmem:[%s3421_s28 + $0x20] sm:$0xff]  ;;  %v478_v20 = vld [vmem:[%s3421_s28 + $0xb0] sm:$0xff]  ;;  %s1320_s15 = scalar_lea.vmem [#allocation2], %s2064_s19  ;;  %s3096_s27 = smov (!%p2065_p9), 1  }
  0xfa   : > { %2575 = vmatpush3.bf16.msra.mxu1 %v2409_v10  ;;  %2410 = vmatpush3.bf16.msra.mxu0 %v2409_v10  ;;  %v2415_v17 = vpack.c.bf16 %v477_v15, %v476_v14  ;;  %v461_v19 = vld [vmem:[%s3421_s28 + $0x28] sm:$0xff]  ;;  %v479_v21 = vld [vmem:[%s3421_s28 + $0xb8] sm:$0xff]  ;;  %v462_v24 = vld [vmem:[%s3421_s28 + $0x30] sm:$0xff] }
  0xfb   : > { %2568 = vmatprep.subr.bf16.mxu1 %v2411_v11  ;;  %2412 = vmatprep.subr.bf16.mxu0 %v2411_v11  ;;  %v2417_v22 = vpack.c.bf16 %v461_v19, %v460_v18  ;;  %v2419_v23 = vpack.c.bf16 %v479_v21, %v478_v20  ;;  %v463_v25 = vld [vmem:[%s3421_s28 + $0x38] sm:$0xff]  ;;  %v480_v26 = vld [vmem:[%s3421_s28 + $0xc0] sm:$0xff]  ;;  %v481_v27 = vld [vmem:[%s3421_s28 + $0xc8] sm:$0xff] }
  0xfc   : > { %v601_v28 = vld [vmem:[#allocation9 + $0x188] sm:$0xff]  ;;  %v2421_v30 = vpack.c.bf16 %v463_v25, %v462_v24  ;;  %v2423_v31 = vpack.c.bf16 %v481_v27, %v480_v26  ;;  %v464_v32 = vld [vmem:[%s3421_s28 + $0x40] sm:$0xff]  ;;  %v482_v34 = vld [vmem:[%s3421_s28 + $0xd0] sm:$0xff] }
  0xfd   : > { %848 = vmatprep.mubr.f32.mxu1 %v601_v28  ;;  %v553_v29 = vld [vmem:[#allocation9 + $0x8] sm:$0xff]  ;;  %v483_v35 = vld [vmem:[%s3421_s28 + $0xd8] sm:$0xff]  ;;  %v466_v38 = vld [vmem:[%s3421_s28 + $0x50] sm:$0xff] }
  0xfe   : > { %2576 = vmatpush3.bf16.msra.mxu1 %v2413_v16  ;;  %2414 = vmatpush3.bf16.msra.mxu0 %v2413_v16  ;;  %v465_v33 = vld [vmem:[%s3421_s28 + $0x48] sm:$0xff]  ;;  %v2427_v37 = vpack.c.bf16 %v483_v35, %v482_v34  ;;  %v467_v39 = vld [vmem:[%s3421_s28 + $0x58] sm:$0xff]  ;;  %v484_v40 = vld [vmem:[%s3421_s28 + $0xe0] sm:$0xff] }
  0xff   : > { %2569 = vmatprep.subr.bf16.mxu1 %v2415_v17  ;;  %2416 = vmatprep.subr.bf16.mxu0 %v2415_v17  ;;  %v2425_v36 = vpack.c.bf16 %v465_v33, %v464_v32  ;;  %v485_v41 = vld [vmem:[%s3421_s28 + $0xe8] sm:$0xff]  ;;  %v2429_v42 = vpack.c.bf16 %v467_v39, %v466_v38  ;;  %v468_v44 = vld [vmem:[%s3421_s28 + $0x60] sm:$0xff]  ;;  %v486_v46 = vld [vmem:[%s3421_s28 + $0xf0] sm:$0xff] }
 0x100   : > { %808 = vmatprep.mubr.f32.mxu0 %v553_v29  ;;  %v2431_v43 = vpack.c.bf16 %v485_v41, %v484_v40  ;;  %v469_v45 = vld [vmem:[%s3421_s28 + $0x68] sm:$0xff]  ;;  %v487_v47 = vld [vmem:[%s3421_s28 + $0xf8] sm:$0xff]  ;;  %v470_v50 = vld [vmem:[%s3421_s28 + $0x70] sm:$0xff] }
 0x101   : > { %v2433_v48 = vpack.c.bf16 %v469_v45, %v468_v44  ;;  %v2435_v49 = vpack.c.bf16 %v487_v47, %v486_v46  ;;  %v471_v51 = vld [vmem:[%s3421_s28 + $0x78] sm:$0xff]  ;;  %v504_v52 = vld [vmem:[%s3421_s28 + $0x180] sm:$0xff]  ;;  %v505_v53 = vld [vmem:[%s3421_s28 + $0x188] sm:$0xff] }
 0x102   : > { %2577 = vmatpush3.bf16.msra.mxu1 %v2417_v22  ;;  %2418 = vmatpush3.bf16.msra.mxu0 %v2417_v22  ;;  %v536_v54 = vld [vmem:[%s3421_s28 + $0x280] sm:$0xff]  ;;  %v537_v55 = vld [vmem:[%s3421_s28 + $0x288] sm:$0xff]  ;;  %v2437_v56 = vpack.c.bf16 %v471_v51, %v470_v50  ;;  %v2439_v58 = vpack.c.bf16 %v505_v53, %v504_v52  ;;  %v506_v63 = vld [vmem:[%s3421_s28 + $0x190] sm:$0xff] }
 0x103   : > { %2570 = vmatprep.subr.bf16.mxu1 %v2419_v23  ;;  %2420 = vmatprep.subr.bf16.mxu0 %v2419_v23  ;;  %v488_v57 = vld [vmem:[%s3421_s28 + $0x100] sm:$0xff]  ;;  %v489_v59 = vld [vmem:[%s3421_s28 + $0x108] sm:$0xff]  ;;  %v2471_v60 = vpack.c.bf16 %v537_v55, %v536_v54  ;;  %v507_v0 = vld [vmem:[%s3421_s28 + $0x198] sm:$0xff] }
 0x104   : > { %v520_v61 = vld [vmem:[%s3421_s28 + $0x200] sm:$0xff]  ;;  %v521_v62 = vld [vmem:[%s3421_s28 + $0x208] sm:$0xff]  ;;  %v538_v1 = vld [vmem:[%s3421_s28 + $0x290] sm:$0xff]  ;;  %v2441_v5 = vpack.c.bf16 %v489_v59, %v488_v57  ;;  %v2443_v13 = vpack.c.bf16 %v507_v0, %v506_v63 }
 0x105   : > { %v539_v2 = vld [vmem:[%s3421_s28 + $0x298] sm:$0xff]  ;;  %v600_v3 = vld [vmem:[#allocation9 + $0x180] sm:$0xff]  ;;  %v2473_v6 = vpack.c.bf16 %v521_v62, %v520_v61  ;;  %v490_v7 = vld [vmem:[%s3421_s28 + $0x110] sm:$0xff] }
 0x106   : > { %2578 = vmatpush3.bf16.msra.mxu1 %v2421_v30  ;;  %2422 = vmatpush3.bf16.msra.mxu0 %v2421_v30  ;;  %v552_v4 = vld [vmem:[#allocation9] sm:$0xff]  ;;  %v491_v8 = vld [vmem:[%s3421_s28 + $0x118] sm:$0xff]  ;;  %v522_v9 = vld [vmem:[%s3421_s28 + $0x210] sm:$0xff]  ;;  %v2475_v14 = vpack.c.bf16 %v539_v2, %v538_v1 }
 0x107   : > { %2571 = vmatprep.subr.bf16.mxu1 %v2423_v31  ;;  %2424 = vmatprep.subr.bf16.mxu0 %v2423_v31  ;;  %v523_v10 = vld [vmem:[%s3421_s28 + $0x218] sm:$0xff]  ;;  %v508_v15 = vld [vmem:[%s3421_s28 + $0x1a0] sm:$0xff]  ;;  %v509_v16 = vld [vmem:[%s3421_s28 + $0x1a8] sm:$0xff]  ;;  %v2445_v21 = vpack.c.bf16 %v491_v8, %v490_v7 }
 0x108   : > { %v607_v11 = vld [vmem:[#allocation9 + $0x1b8] sm:$0xff]  ;;  %v540_v17 = vld [vmem:[%s3421_s28 + $0x2a0] sm:$0xff]  ;;  %v541_v18 = vld [vmem:[%s3421_s28 + $0x2a8] sm:$0xff]  ;;  %v2477_v22 = vpack.c.bf16 %v523_v10, %v522_v9  ;;  %v2447_v29 = vpack.c.bf16 %v509_v16, %v508_v15 }
 0x109   : > { %v559_v12 = vld [vmem:[#allocation9 + $0x38] sm:$0xff]  ;;  %v606_v19 = vld [vmem:[#allocation9 + $0x1b0] sm:$0xff]  ;;  %v492_v23 = vld [vmem:[%s3421_s28 + $0x120] sm:$0xff]  ;;  %v2479_v30 = vpack.c.bf16 %v541_v18, %v540_v17 }
 0x10a   : > { %2579 = vmatpush3.bf16.msra.mxu1 %v2425_v36  ;;  %2426 = vmatpush3.bf16.msra.mxu0 %v2425_v36  ;;  %v558_v20 = vld [vmem:[#allocation9 + $0x30] sm:$0xff]  ;;  %v493_v24 = vld [vmem:[%s3421_s28 + $0x128] sm:$0xff]  ;;  %v524_v25 = vld [vmem:[%s3421_s28 + $0x220] sm:$0xff] }
 0x10b   : > { %2572 = vmatprep.subr.bf16.mxu1 %v2427_v37  ;;  %2428 = vmatprep.subr.bf16.mxu0 %v2427_v37  ;;  %v525_v26 = vld [vmem:[%s3421_s28 + $0x228] sm:$0xff]  ;;  %v510_v31 = vld [vmem:[%s3421_s28 + $0x1b0] sm:$0xff]  ;;  %v511_v32 = vld [vmem:[%s3421_s28 + $0x1b8] sm:$0xff]  ;;  %v2449_v37 = vpack.c.bf16 %v493_v24, %v492_v23 }
 0x10c   : > { %v613_v27 = vld [vmem:[#allocation9 + $0x1e8] sm:$0xff]  ;;  %v542_v33 = vld [vmem:[%s3421_s28 + $0x2b0] sm:$0xff]  ;;  %v543_v34 = vld [vmem:[%s3421_s28 + $0x2b8] sm:$0xff]  ;;  %v2481_v38 = vpack.c.bf16 %v525_v26, %v524_v25  ;;  %v2451_v45 = vpack.c.bf16 %v511_v32, %v510_v31 }
 0x10d   : > { %v565_v28 = vld [vmem:[#allocation9 + $0x68] sm:$0xff]  ;;  %v612_v35 = vld [vmem:[#allocation9 + $0x1e0] sm:$0xff]  ;;  %v494_v39 = vld [vmem:[%s3421_s28 + $0x130] sm:$0xff]  ;;  %v2483_v46 = vpack.c.bf16 %v543_v34, %v542_v33 }
 0x10e   : > { %2580 = vmatpush3.bf16.msra.mxu1 %v2429_v42  ;;  %2430 = vmatpush3.bf16.msra.mxu0 %v2429_v42  ;;  %v564_v36 = vld [vmem:[#allocation9 + $0x60] sm:$0xff]  ;;  %v495_v40 = vld [vmem:[%s3421_s28 + $0x138] sm:$0xff]  ;;  %v526_v41 = vld [vmem:[%s3421_s28 + $0x230] sm:$0xff] }
 0x10f   : > { %2573 = vmatprep.subr.bf16.mxu1 %v2431_v43  ;;  %2432 = vmatprep.subr.bf16.mxu0 %v2431_v43  ;;  %v527_v42 = vld [vmem:[%s3421_s28 + $0x238] sm:$0xff]  ;;  %v512_v47 = vld [vmem:[%s3421_s28 + $0x1c0] sm:$0xff]  ;;  %v545_v50 = vld [vmem:[%s3421_s28 + $0x2c8] sm:$0xff]  ;;  %v2453_v53 = vpack.c.bf16 %v495_v40, %v494_v39 }
 0x110   : > { %v619_v43 = vld [vmem:[#allocation9 + $0x218] sm:$0xff]  ;;  %v618_v51 = vld [vmem:[#allocation9 + $0x210] sm:$0xff]  ;;  %v2485_v54 = vpack.c.bf16 %v527_v42, %v526_v41  ;;  %v496_v55 = vld [vmem:[%s3421_s28 + $0x140] sm:$0xff] }
 0x111   : > { %v571_v44 = vld [vmem:[#allocation9 + $0x98] sm:$0xff]  ;;  %v570_v52 = vld [vmem:[#allocation9 + $0x90] sm:$0xff]  ;;  %v528_v57 = vld [vmem:[%s3421_s28 + $0x240] sm:$0xff] }
 0x112   : > { %2581 = vmatpush3.bf16.msra.mxu1 %v2433_v48  ;;  %2434 = vmatpush3.bf16.msra.mxu0 %v2433_v48  ;;  %v513_v48 = vld [vmem:[%s3421_s28 + $0x1c8] sm:$0xff]  ;;  %v514_v63 = vld [vmem:[%s3421_s28 + $0x1d0] sm:$0xff]  ;;  %v515_v0 = vld [vmem:[%s3421_s28 + $0x1d8] sm:$0xff] }
 0x113   : > { %2574 = vmatprep.subr.bf16.mxu1 %v2435_v49  ;;  %2436 = vmatprep.subr.bf16.mxu0 %v2435_v49  ;;  %v544_v49 = vld [vmem:[%s3421_s28 + $0x2c0] sm:$0xff]  ;;  %v625_v59 = vld [vmem:[#allocation9 + $0x248] sm:$0xff]  ;;  %v2455_v61 = vpack.c.bf16 %v513_v48, %v512_v47  ;;  %v546_v1 = vld [vmem:[%s3421_s28 + $0x2d0] sm:$0xff] }
 0x114   : > { %v2487_v62 = vpack.c.bf16 %v545_v50, %v544_v49  ;;  %v547_v2 = vld [vmem:[%s3421_s28 + $0x2d8] sm:$0xff]  ;;  %v498_v7 = vld [vmem:[%s3421_s28 + $0x150] sm:$0xff]  ;;  %v516_v15 = vld [vmem:[%s3421_s28 + $0x1e0] sm:$0xff] }
 0x115   : > { %v499_v8 = vld [vmem:[%s3421_s28 + $0x158] sm:$0xff]  ;;  %v530_v9 = vld [vmem:[%s3421_s28 + $0x250] sm:$0xff]  ;;  %v517_v16 = vld [vmem:[%s3421_s28 + $0x1e8] sm:$0xff] }
 0x116   : > { %2582 = vmatpush3.bf16.msra.mxu1 %v2437_v56  ;;  %2438 = vmatpush3.bf16.msra.mxu0 %v2437_v56  ;;  %v497_v56 = vld [vmem:[%s3421_s28 + $0x148] sm:$0xff]  ;;  %v531_v10 = vld [vmem:[%s3421_s28 + $0x258] sm:$0xff]  ;;  %v548_v17 = vld [vmem:[%s3421_s28 + $0x2e0] sm:$0xff] }
 0x117   : > { %2440 = vmatprep.subr.bf16.mxu1 %v2439_v58  ;;  %2472 = vmatprep.subr.bf16.mxu0 %v2471_v60  ;;  %v529_v58 = vld [vmem:[%s3421_s28 + $0x248] sm:$0xff]  ;;  %v500_v23 = vld [vmem:[%s3421_s28 + $0x160] sm:$0xff]  ;;  %v518_v31 = vld [vmem:[%s3421_s28 + $0x1f0] sm:$0xff] }
 0x118   : > { %v577_v60 = vld [vmem:[#allocation9 + $0xc8] sm:$0xff]  ;;  %v532_v25 = vld [vmem:[%s3421_s28 + $0x260] sm:$0xff]  ;;  %v519_v32 = vld [vmem:[%s3421_s28 + $0x1f8] sm:$0xff] }
 0x119   : > { %849 = vmatmul.mubr.f32.vlgmr.msra.gmra.mrb[0].mxu1 %v600_v3  ;;  %809 = vmatmul.mubr.f32.vlgmr.msra.gmra.mrb[0].mxu0 %v552_v4  ;;  %v624_v3 = vld [vmem:[#allocation9 + $0x240] sm:$0xff]  ;;  %v549_v18 = vld [vmem:[%s3421_s28 + $0x2e8] sm:$0xff]  ;;  %v550_v33 = vld [vmem:[%s3421_s28 + $0x2f0] sm:$0xff] }
 0x11a   : > { %2442 = vmatpush3.bf16.msra.mxu1 %v2441_v5  ;;  %2474 = vmatpush3.bf16.msra.mxu0 %v2473_v6  ;;  %v576_v4 = vld [vmem:[#allocation9 + $0xc0] sm:$0xff]  ;;  %v2457_v5 = vpack.c.bf16 %v497_v56, %v496_v55  ;;  %v2489_v6 = vpack.c.bf16 %v529_v58, %v528_v57  ;;  %v501_v24 = vld [vmem:[%s3421_s28 + $0x168] sm:$0xff]  ;;  %v551_v34 = vld [vmem:[%s3421_s28 + $0x2f8] sm:$0xff] }
 0x11b   : > { %853 = vmatprep.mubr.f32.mxu1 %v607_v11  ;;  %813 = vmatprep.mubr.f32.mxu0 %v559_v12  ;;  %v631_v11 = vld [vmem:[#allocation9 + $0x278] sm:$0xff]  ;;  %v533_v26 = vld [vmem:[%s3421_s28 + $0x268] sm:$0xff]  ;;  %v502_v39 = vld [vmem:[%s3421_s28 + $0x170] sm:$0xff] }
 0x11c   : > { %2444 = vmatprep.subr.bf16.mxu1 %v2443_v13  ;;  %2476 = vmatprep.subr.bf16.mxu0 %v2475_v14  ;;  %v583_v12 = vld [vmem:[#allocation9 + $0xf8] sm:$0xff]  ;;  %v2459_v13 = vpack.c.bf16 %v515_v0, %v514_v63  ;;  %v2491_v14 = vpack.c.bf16 %v547_v2, %v546_v1  ;;  %v534_v41 = vld [vmem:[%s3421_s28 + $0x270] sm:$0xff]  ;;  %v556_v56 = vld [vmem:[#allocation9 + $0x20] sm:$0xff] }
 0x11d   : > { %854 = vmatmul.mubr.f32.gmra.mrb[2].mxu1 %v606_v19  ;;  %814 = vmatmul.mubr.f32.gmra.mrb[2].mxu0 %v558_v20  ;;  %v630_v19 = vld [vmem:[#allocation9 + $0x270] sm:$0xff]  ;;  %v503_v40 = vld [vmem:[%s3421_s28 + $0x178] sm:$0xff]  ;;  %v561_v57 = vld [vmem:[#allocation9 + $0x48] sm:$0xff] }
 0x11e   : > { %2446 = vmatpush3.bf16.msra.mxu1 %v2445_v21  ;;  %2478 = vmatpush3.bf16.msra.mxu0 %v2477_v22  ;;  %v582_v20 = vld [vmem:[#allocation9 + $0xf0] sm:$0xff]  ;;  %v2461_v21 = vpack.c.bf16 %v499_v8, %v498_v7  ;;  %v2493_v22 = vpack.c.bf16 %v531_v10, %v530_v9  ;;  %v535_v42 = vld [vmem:[%s3421_s28 + $0x278] sm:$0xff]  ;;  %v2469_v49 = vpack.c.bf16 %v503_v40, %v502_v39  ;;  %v569_v0 = vld [vmem:[#allocation9 + $0x88] sm:$0xff] }
 0x11f   : > { %858 = vmatprep.mubr.f32.mxu1 %v613_v27  ;;  %818 = vmatprep.mubr.f32.mxu0 %v565_v28  ;;  %v637_v27 = vld [vmem:[#allocation9 + $0x2a8] sm:$0xff]  ;;  %v642_v47 = vld [vmem:[#allocation9 + $0x2d0] sm:$0xff]  ;;  %v2501_v50 = vpack.c.bf16 %v535_v42, %v534_v41  ;;  %v563_v58 = vld [vmem:[#allocation9 + $0x58] sm:$0xff] }
 0x120   : > { %2448 = vmatprep.subr.bf16.mxu1 %v2447_v29  ;;  %2480 = vmatprep.subr.bf16.mxu0 %v2479_v30  ;;  %v589_v28 = vld [vmem:[#allocation9 + $0x128] sm:$0xff]  ;;  %v2463_v29 = vpack.c.bf16 %v517_v16, %v516_v15  ;;  %v2495_v30 = vpack.c.bf16 %v549_v18, %v548_v17  ;;  %v594_v48 = vld [vmem:[#allocation9 + $0x150] sm:$0xff]  ;;  %v567_v63 = vld [vmem:[#allocation9 + $0x78] sm:$0xff] }
 0x121   : > { %859 = vmatmul.mubr.f32.gmra.mrb[4].mxu1 %v612_v35  ;;  %819 = vmatmul.mubr.f32.gmra.mrb[4].mxu0 %v564_v36  ;;  %v636_v35 = vld [vmem:[#allocation9 + $0x2a0] sm:$0xff]  ;;  %v554_v55 = vld [vmem:[#allocation9 + $0x10] sm:$0xff]  ;;  %v653_v2 = vld [vmem:[#allocation11 + $0x28] sm:$0xff] }
 0x122   : > { %2450 = vmatpush3.bf16.msra.mxu1 %v2449_v37  ;;  %2482 = vmatpush3.bf16.msra.mxu0 %v2481_v38  ;;  %v588_v36 = vld [vmem:[#allocation9 + $0x120] sm:$0xff]  ;;  %v2465_v37 = vpack.c.bf16 %v501_v24, %v500_v23  ;;  %v2497_v38 = vpack.c.bf16 %v533_v26, %v532_v25  ;;  %v654_v7 = vld [vmem:[#allocation11 + $0x30] sm:$0xff]  ;;  %v655_v8 = vld [vmem:[#allocation11 + $0x38] sm:$0xff] }
 0x123   : > { %863 = vmatprep.mubr.f32.mxu1 %v619_v43  ;;  %823 = vmatprep.mubr.f32.mxu0 %v571_v44  ;;  %v643_v43 = vld [vmem:[#allocation9 + $0x2d8] sm:$0xff]  ;;  %v652_v1 = vld [vmem:[#allocation11 + $0x20] sm:$0xff]  ;;  %v574_v10 = vld [vmem:[#allocation9 + $0xb0] sm:$0xff] }
 0x124   : > { %2452 = vmatprep.subr.bf16.mxu1 %v2451_v45  ;;  %2484 = vmatprep.subr.bf16.mxu0 %v2483_v46  ;;  %v595_v44 = vld [vmem:[#allocation9 + $0x158] sm:$0xff]  ;;  %v2467_v45 = vpack.c.bf16 %v519_v32, %v518_v31  ;;  %v2499_v46 = vpack.c.bf16 %v551_v34, %v550_v33  ;;  %v572_v9 = vld [vmem:[#allocation9 + $0xa0] sm:$0xff]  ;;  %v578_v15 = vld [vmem:[#allocation9 + $0xd0] sm:$0xff] }
 0x125   : > { %864 = vmatmul.mubr.f32.gmra.mrb[6].mxu1 %v618_v51  ;;  %824 = vmatmul.mubr.f32.gmra.mrb[6].mxu0 %v570_v52  ;;  %v555_v51 = vld [vmem:[#allocation9 + $0x18] sm:$0xff]  ;;  %v557_v52 = vld [vmem:[#allocation9 + $0x28] sm:$0xff]  ;;  %v580_v16 = vld [vmem:[#allocation9 + $0xe0] sm:$0xff] }
 0x126   : > { %2454 = vmatpush3.bf16.msra.mxu1 %v2453_v53  ;;  %2486 = vmatpush3.bf16.msra.mxu0 %v2485_v54  ;;  %v648_v53 = vld [vmem:[#allocation11] sm:$0xff]  ;;  %v650_v54 = vld [vmem:[#allocation11 + $0x10] sm:$0xff]  ;;  %v585_v17 = vld [vmem:[#allocation9 + $0x108] sm:$0xff] }
 0x127   : > { %868 = vmatprep.mubr.f32.mxu1 %v625_v59  ;;  %828 = vmatprep.mubr.f32.mxu0 %v577_v60  ;;  %v649_v59 = vld [vmem:[#allocation11 + $0x8] sm:$0xff]  ;;  %v651_v60 = vld [vmem:[#allocation11 + $0x18] sm:$0xff]  ;;  %v660_v25 = vld [vmem:[#allocation11 + $0x60] sm:$0xff] }
 0x128   : > { %2456 = vmatprep.subr.bf16.mxu1 %v2455_v61  ;;  %2488 = vmatprep.subr.bf16.mxu0 %v2487_v62  ;;  %v560_v61 = vld [vmem:[#allocation9 + $0x40] sm:$0xff]  ;;  %v562_v62 = vld [vmem:[#allocation9 + $0x50] sm:$0xff]  ;;  %v587_v18 = vld [vmem:[#allocation9 + $0x118] sm:$0xff] }
 0x129   : > { %869 = vmatmul.mubr.f32.gmra.mrb[8].mxu1 %v624_v3  ;;  %829 = vmatmul.mubr.f32.gmra.mrb[8].mxu0 %v576_v4  ;;  %v566_v3 = vld [vmem:[#allocation9 + $0x70] sm:$0xff]  ;;  %v568_v4 = vld [vmem:[#allocation9 + $0x80] sm:$0xff]  ;;  %v591_v23 = vld [vmem:[#allocation9 + $0x138] sm:$0xff] }
 0x12a   : > { %2458 = vmatpush3.bf16.msra.mxu1 %v2457_v5  ;;  %2490 = vmatpush3.bf16.msra.mxu0 %v2489_v6  ;;  %v573_v5 = vld [vmem:[#allocation9 + $0xa8] sm:$0xff]  ;;  %v575_v6 = vld [vmem:[#allocation9 + $0xb8] sm:$0xff]  ;;  %v662_v31 = vld [vmem:[#allocation11 + $0x70] sm:$0xff] }
 0x12b   : > { %873 = vmatprep.mubr.f32.mxu1 %v631_v11  ;;  %833 = vmatprep.mubr.f32.mxu0 %v583_v12  ;;  %v579_v11 = vld [vmem:[#allocation9 + $0xd8] sm:$0xff]  ;;  %v581_v12 = vld [vmem:[#allocation9 + $0xe8] sm:$0xff]  ;;  %v596_v33 = vld [vmem:[#allocation9 + $0x160] sm:$0xff] }
 0x12c   : > { %2460 = vmatprep.subr.bf16.mxu1 %v2459_v13  ;;  %2492 = vmatprep.subr.bf16.mxu0 %v2491_v14  ;;  %v656_v13 = vld [vmem:[#allocation11 + $0x40] sm:$0xff]  ;;  %v657_v14 = vld [vmem:[#allocation11 + $0x48] sm:$0xff]  ;;  %v663_v32 = vld [vmem:[#allocation11 + $0x78] sm:$0xff] }
 0x12d   : > { %874 = vmatmul.mubr.f32.gmra.mrb[10].mxu1 %v630_v19  ;;  %834 = vmatmul.mubr.f32.gmra.mrb[10].mxu0 %v582_v20  ;;  %v658_v19 = vld [vmem:[#allocation11 + $0x50] sm:$0xff]  ;;  %v659_v20 = vld [vmem:[#allocation11 + $0x58] sm:$0xff]  ;;  %v593_v24 = vld [vmem:[#allocation9 + $0x148] sm:$0xff] }
 0x12e   : > { %2462 = vmatpush3.bf16.msra.mxu1 %v2461_v21  ;;  %2494 = vmatpush3.bf16.msra.mxu0 %v2493_v22  ;;  %v584_v21 = vld [vmem:[#allocation9 + $0x100] sm:$0xff]  ;;  %v586_v22 = vld [vmem:[#allocation9 + $0x110] sm:$0xff]  ;;  %v661_v26 = vld [vmem:[#allocation11 + $0x68] sm:$0xff] }
 0x12f   : > { %878 = vmatprep.mubr.f32.mxu1 %v637_v27  ;;  %838 = vmatprep.mubr.f32.mxu0 %v589_v28  ;;  %v590_v27 = vld [vmem:[#allocation9 + $0x130] sm:$0xff]  ;;  %v592_v28 = vld [vmem:[#allocation9 + $0x140] sm:$0xff]  ;;  %v609_v41 = vld [vmem:[#allocation9 + $0x1c8] sm:$0xff] }
 0x130   : > { %2464 = vmatprep.subr.bf16.mxu1 %v2463_v29  ;;  %2496 = vmatprep.subr.bf16.mxu0 %v2495_v30  ;;  %v597_v29 = vld [vmem:[#allocation9 + $0x168] sm:$0xff]  ;;  %v599_v30 = vld [vmem:[#allocation9 + $0x178] sm:$0xff]  ;;  %v598_v34 = vld [vmem:[#allocation9 + $0x170] sm:$0xff] }
 0x131   : > { %879 = vmatmul.mubr.f32.gmra.mrb[12].mxu1 %v636_v35  ;;  %839 = vmatmul.mubr.f32.gmra.mrb[12].mxu0 %v588_v36  ;;  %v603_v35 = vld [vmem:[#allocation9 + $0x198] sm:$0xff]  ;;  %v605_v36 = vld [vmem:[#allocation9 + $0x1a8] sm:$0xff]  ;;  %v602_v39 = vld [vmem:[#allocation9 + $0x190] sm:$0xff] }
 0x132   : > { %2466 = vmatpush3.bf16.msra.mxu1 %v2465_v37  ;;  %2498 = vmatpush3.bf16.msra.mxu0 %v2497_v38  ;;  %v1229_v37 = vld [vmem:[#allocation14] sm:$0xff]  ;;  %v1230_v38 = vld [vmem:[#allocation14 + $0x8] sm:$0xff]  ;;  %v604_v40 = vld [vmem:[#allocation9 + $0x1a0] sm:$0xff] }
 0x133   : > { %883 = vmatprep.mubr.f32.mxu1 %v643_v43  ;;  %843 = vmatprep.mubr.f32.mxu0 %v595_v44  ;;  %v611_v42 = vld [vmem:[#allocation9 + $0x1d8] sm:$0xff]  ;;  %v608_v43 = vld [vmem:[#allocation9 + $0x1c0] sm:$0xff]  ;;  %v610_v44 = vld [vmem:[#allocation9 + $0x1d0] sm:$0xff] }
 0x134   : > { %2468 = vmatprep.subr.bf16.mxu1 %v2467_v45  ;;  %2500 = vmatprep.subr.bf16.mxu0 %v2499_v46  ;;  %v615_v45 = vld [vmem:[#allocation9 + $0x1f8] sm:$0xff]  ;;  %v617_v46 = vld [vmem:[#allocation9 + $0x208] sm:$0xff] }
 0x135   : > { %884 = vmatmul.mubr.f32.gmra.mrb[14].mxu1 %v642_v47  ;;  %844 = vmatmul.mubr.f32.gmra.mrb[14].mxu0 %v594_v48  ;;  %v614_v47 = vld [vmem:[#allocation9 + $0x1f0] sm:$0xff]  ;;  %v616_v48 = vld [vmem:[#allocation9 + $0x200] sm:$0xff] }
 0x136   : > { %2470 = vmatpush3.bf16.msra.mxu1 %v2469_v49  ;;  %2502 = vmatpush3.bf16.msra.mxu0 %v2501_v50  ;;  %v621_v49 = vld [vmem:[#allocation9 + $0x228] sm:$0xff]  ;;  %v623_v50 = vld [vmem:[#allocation9 + $0x238] sm:$0xff] }
 0x137   : > { %953 = vmatprep.mubr.f32.mxu1 %v555_v51  ;;  %1098 = vmatprep.mubr.f32.mxu0 %v557_v52  ;;  %v620_v51 = vld [vmem:[#allocation9 + $0x220] sm:$0xff]  ;;  %v622_v52 = vld [vmem:[#allocation9 + $0x230] sm:$0xff] }
 0x138   : > { %666 = vperm.xlu0 %2734, %v648_v53   ;;  %676 = vperm.xlu1 %2735, %v650_v54   ;;  %v627_v53 = vld [vmem:[#allocation9 + $0x258] sm:$0xff]  ;;  %v629_v54 = vld [vmem:[#allocation9 + $0x268] sm:$0xff] }
 0x139   : > { %954 = vmatmul.mubr.f32.vlgmr.msra.gmra.mrb[16].mxu1 %v554_v55  ;;  %1099 = vmatmul.mubr.f32.vlgmr.msra.gmra.mrb[16].mxu0 %v556_v56  ;;  %v626_v55 = vld [vmem:[#allocation9 + $0x250] sm:$0xff]  ;;  %v628_v56 = vld [vmem:[#allocation9 + $0x260] sm:$0xff] }
 0x13a   : > { %958 = vmatprep.mubr.f32.mxu1 %v561_v57  ;;  %1103 = vmatprep.mubr.f32.mxu0 %v563_v58  ;;  %v633_v57 = vld [vmem:[#allocation9 + $0x288] sm:$0xff]  ;;  %v635_v58 = vld [vmem:[#allocation9 + $0x298] sm:$0xff] }
 0x13c   : > { %671 = vperm.xlu0 %2734, %v649_v59   ;;  %681 = vperm.xlu1 %2735, %v651_v60   ;;  %v632_v59 = vld [vmem:[#allocation9 + $0x280] sm:$0xff]  ;;  %v634_v60 = vld [vmem:[#allocation9 + $0x290] sm:$0xff] }
 0x13d   : > { %959 = vmatmul.mubr.f32.gmra.mrb[18].mxu1 %v560_v61  ;;  %1104 = vmatmul.mubr.f32.gmra.mrb[18].mxu0 %v562_v62  ;;  %v639_v61 = vld [vmem:[#allocation9 + $0x2b8] sm:$0xff]  ;;  %v641_v62 = vld [vmem:[#allocation9 + $0x2c8] sm:$0xff] }
 0x13e   : > { %963 = vmatprep.mubr.f32.mxu1 %v567_v63  ;;  %1108 = vmatprep.mubr.f32.mxu0 %v569_v0  ;;  %v638_v63 = vld [vmem:[#allocation9 + $0x2b0] sm:$0xff]  ;;  %v640_v0 = vld [vmem:[#allocation9 + $0x2c0] sm:$0xff] }
 0x140   : > { %686 = vperm.xlu0 %2734, %v652_v1   ;;  %691 = vperm.xlu1 %2735, %v653_v2   ;;  %v645_v1 = vld [vmem:[#allocation9 + $0x2e8] sm:$0xff]  ;;  %v647_v2 = vld [vmem:[#allocation9 + $0x2f8] sm:$0xff] }
 0x141   : > { %964 = vmatmul.mubr.f32.gmra.mrb[20].mxu1 %v566_v3  ;;  %1109 = vmatmul.mubr.f32.gmra.mrb[20].mxu0 %v568_v4  ;;  %v644_v3 = vld [vmem:[#allocation9 + $0x2e0] sm:$0xff]  ;;  %v646_v4 = vld [vmem:[#allocation9 + $0x2f0] sm:$0xff] }
 0x142   : > { %968 = vmatprep.mubr.f32.mxu1 %v573_v5  ;;  %1113 = vmatprep.mubr.f32.mxu0 %v575_v6  ;;  %v1227_v5 = vld [vmem:[#allocation12] sm:$0xff] }
 0x144   : > { %696 = vperm.xlu0 %2734, %v654_v7   ;;  %701 = vperm.xlu1 %2735, %v655_v8  }
 0x145   : > { %969 = vmatmul.mubr.f32.gmra.mrb[22].mxu1 %v572_v9  ;;  %1114 = vmatmul.mubr.f32.gmra.mrb[22].mxu0 %v574_v10 }
 0x146   : > { %973 = vmatprep.mubr.f32.mxu1 %v579_v11  ;;  %1118 = vmatprep.mubr.f32.mxu0 %v581_v12 }
 0x148   : > { %706 = vperm.xlu0 %2734, %v656_v13   ;;  %711 = vperm.xlu1 %2735, %v657_v14  }
 0x149   : > { %974 = vmatmul.mubr.f32.gmra.mrb[24].mxu1 %v578_v15  ;;  %1119 = vmatmul.mubr.f32.gmra.mrb[24].mxu0 %v580_v16 }
 0x14a   : > { %978 = vmatprep.mubr.f32.mxu1 %v585_v17  ;;  %1123 = vmatprep.mubr.f32.mxu0 %v587_v18 }
 0x14c   : > { %716 = vperm.xlu0 %2734, %v658_v19   ;;  %721 = vperm.xlu1 %2735, %v659_v20  }
 0x14d   : > { %979 = vmatmul.mubr.f32.gmra.mrb[26].mxu1 %v584_v21  ;;  %1124 = vmatmul.mubr.f32.gmra.mrb[26].mxu0 %v586_v22 }
 0x14e   : > { %983 = vmatprep.mubr.f32.mxu1 %v591_v23  ;;  %1128 = vmatprep.mubr.f32.mxu0 %v593_v24 }
 0x150   : > { %726 = vperm.xlu0 %2734, %v660_v25   ;;  %731 = vperm.xlu1 %2735, %v661_v26  }
 0x151   : > { %984 = vmatmul.mubr.f32.gmra.mrb[28].mxu1 %v590_v27  ;;  %1129 = vmatmul.mubr.f32.gmra.mrb[28].mxu0 %v592_v28 }
 0x152   : > { %988 = vmatprep.mubr.f32.mxu1 %v597_v29  ;;  %1133 = vmatprep.mubr.f32.mxu0 %v599_v30 }
 0x154   : > { %736 = vperm.xlu0 %2734, %v662_v31   ;;  %741 = vperm.xlu1 %2735, %v663_v32  }
 0x155   : > { %989 = vmatmul.mubr.f32.gmra.mrb[30].mxu1 %v596_v33  ;;  %1134 = vmatmul.mubr.f32.gmra.mrb[30].mxu0 %v598_v34 }
 0x156   : > { %993 = vmatprep.mubr.f32.mxu1 %v603_v35  ;;  %1138 = vmatprep.mubr.f32.mxu0 %v605_v36 }
 0x158   : > { %1233 = vperm.xlu0 %2734, %v1229_v37   ;;  %1238 = vperm.xlu1 %2735, %v1230_v38  }
 0x159   : > { %994 = vmatmul.mubr.f32.gmra.mrb[32].mxu1 %v602_v39  ;;  %1139 = vmatmul.mubr.f32.gmra.mrb[32].mxu0 %v604_v40 }
 0x15a   : > { %998 = vmatprep.mubr.f32.mxu1 %v609_v41  ;;  %1143 = vmatprep.mubr.f32.mxu0 %v611_v42 }
 0x15d   : > { %999 = vmatmul.mubr.f32.gmra.mrb[34].mxu1 %v608_v43  ;;  %1144 = vmatmul.mubr.f32.gmra.mrb[34].mxu0 %v610_v44 }
 0x15e   : > { %1003 = vmatprep.mubr.f32.mxu1 %v615_v45  ;;  %1148 = vmatprep.mubr.f32.mxu0 %v617_v46 }
 0x161   : > { %1004 = vmatmul.mubr.f32.gmra.mrb[36].mxu1 %v614_v47  ;;  %1149 = vmatmul.mubr.f32.gmra.mrb[36].mxu0 %v616_v48 }
 0x162   : > { %1008 = vmatprep.mubr.f32.mxu1 %v621_v49  ;;  %1153 = vmatprep.mubr.f32.mxu0 %v623_v50 }
 0x165   : > { %1009 = vmatmul.mubr.f32.gmra.mrb[38].mxu1 %v620_v51  ;;  %1154 = vmatmul.mubr.f32.gmra.mrb[38].mxu0 %v622_v52 }
 0x166   : > { %1013 = vmatprep.mubr.f32.mxu1 %v627_v53  ;;  %1158 = vmatprep.mubr.f32.mxu0 %v629_v54 }
 0x169   : > { %1014 = vmatmul.mubr.f32.gmra.mrb[40].mxu1 %v626_v55  ;;  %1159 = vmatmul.mubr.f32.gmra.mrb[40].mxu0 %v628_v56 }
 0x16a   : > { %1018 = vmatprep.mubr.f32.mxu1 %v633_v57  ;;  %1163 = vmatprep.mubr.f32.mxu0 %v635_v58 }
 0x16d   : > { %1019 = vmatmul.mubr.f32.gmra.mrb[42].mxu1 %v632_v59  ;;  %1164 = vmatmul.mubr.f32.gmra.mrb[42].mxu0 %v634_v60 }
 0x16e   : > { %1023 = vmatprep.mubr.f32.mxu1 %v639_v61  ;;  %1168 = vmatprep.mubr.f32.mxu0 %v641_v62 }
 0x171   : > { %1024 = vmatmul.mubr.f32.gmra.mrb[44].mxu1 %v638_v63  ;;  %1169 = vmatmul.mubr.f32.gmra.mrb[44].mxu0 %v640_v0 }
 0x172   : > { %1028 = vmatprep.mubr.f32.mxu1 %v645_v1  ;;  %1173 = vmatprep.mubr.f32.mxu0 %v647_v2 }
 0x175   : > { %1029 = vmatmul.mubr.f32.gmra.mrb[46].mxu1 %v644_v3  ;;  %1174 = vmatmul.mubr.f32.gmra.mrb[46].mxu0 %v646_v4 }
 0x176   : > { %2404 = vmatprep.mubr.f32.mxu1 %v1227_v5 }
 0x1b7   : > { %v667_v48 = vpop.permute.xlu0 %666  ;;  %v677_v62 = vpop.permute.xlu1 %676 }
 0x1bb   : > { %v672_v63 = vpop.permute.xlu0 %671 }
 0x1ec   : > { %v2126_v6 = vpop.f32.mrb[0].mxu1  ;;  %v2102_v7 = vpop.f32.mrb[0].mxu0 }
 0x1ed   : > { %v2127_v8 = vpop.f32.mrb[1].mxu1  ;;  %v2103_v9 = vpop.f32.mrb[1].mxu0 }
 0x1ee   : > { %v3541_v10 = vadd.f32 %v2127_v8, %v2126_v6  ;;  %v2104_v11 = vadd.f32 %v2103_v9, %v2102_v7 }
 0x1f0   : > { %v2129_v12 = vpop.f32.mrb[2].mxu1  ;;  %v2105_v13 = vpop.f32.mrb[2].mxu0  ;;  %v811_v59 = vadd.f32 %v2104_v11, %v667_v48 }
 0x1f1   : > { %v2130_v14 = vpop.f32.mrb[3].mxu1  ;;  %v2106_v15 = vpop.f32.mrb[3].mxu0 }
 0x1f2   : > { %v3543_v16 = vadd.f32 %v2130_v14, %v2129_v12  ;;  %v2107_v17 = vadd.f32 %v2106_v15, %v2105_v13 }
 0x1f4   : > { %v2132_v18 = vpop.f32.mrb[4].mxu1  ;;  %v2108_v19 = vpop.f32.mrb[4].mxu0  ;;  %v816_v5 = vadd.f32 %v2107_v17, %v672_v63 }
 0x1f5   : > { %v2133_v20 = vpop.f32.mrb[5].mxu1  ;;  %v2109_v21 = vpop.f32.mrb[5].mxu0 }
 0x1f6   : > { %v3545_v22 = vadd.f32 %v2133_v20, %v2132_v18  ;;  %v2110_v23 = vadd.f32 %v2109_v21, %v2108_v19 }
 0x1f8   : > { %v2135_v24 = vpop.f32.mrb[6].mxu1  ;;  %v2111_v25 = vpop.f32.mrb[6].mxu0  ;;  %v821_v14 = vadd.f32 %v2110_v23, %v677_v62 }
 0x1f9   : > { %v2136_v26 = vpop.f32.mrb[7].mxu1  ;;  %v2112_v27 = vpop.f32.mrb[7].mxu0 }
 0x1fa   : > { %v3547_v28 = vadd.f32 %v2136_v26, %v2135_v24  ;;  %v2113_v29 = vadd.f32 %v2112_v27, %v2111_v25  ;;  %v682_v24 = vpop.permute.xlu1 %681 }
 0x1fc   : > { %v2138_v30 = vpop.f32.mrb[8].mxu1  ;;  %v2114_v31 = vpop.f32.mrb[8].mxu0 }
 0x1fd   : > { %v2139_v32 = vpop.f32.mrb[9].mxu1  ;;  %v2115_v33 = vpop.f32.mrb[9].mxu0 }
 0x1fe   : > { %v3549_v34 = vadd.f32 %v2139_v32, %v2138_v30  ;;  %v3551_v35 = vadd.f32 %v2115_v33, %v2114_v31  ;;  %v826_v30 = vadd.f32 %v2113_v29, %v682_v24 }
 0x200   : > { %v2141_v36 = vpop.f32.mrb[10].mxu1  ;;  %v2117_v37 = vpop.f32.mrb[10].mxu0 }
 0x201   : > { %v2142_v38 = vpop.f32.mrb[11].mxu1  ;;  %v2118_v39 = vpop.f32.mrb[11].mxu0 }
 0x202   : > { %v3553_v40 = vadd.f32 %v2142_v38, %v2141_v36  ;;  %v3555_v41 = vadd.f32 %v2118_v39, %v2117_v37  ;;  %v687_v39 = vpop.permute.xlu0 %686 }
 0x203   : > { %v831_v48 = vadd.f32 %v3551_v35, %v687_v39 }
 0x204   : > { %v2144_v42 = vpop.f32.mrb[12].mxu1  ;;  %v2120_v43 = vpop.f32.mrb[12].mxu0 }
 0x205   : > { %v2145_v44 = vpop.f32.mrb[13].mxu1  ;;  %v2121_v45 = vpop.f32.mrb[13].mxu0 }
 0x206   : > { %v3557_v46 = vadd.f32 %v2145_v44, %v2144_v42  ;;  %v3559_v47 = vadd.f32 %v2121_v45, %v2120_v43 }
 0x208   : > { %v2147_v49 = vpop.f32.mrb[14].mxu1  ;;  %v2123_v50 = vpop.f32.mrb[14].mxu0 }
 0x209   : > { %v2148_v51 = vpop.f32.mrb[15].mxu1  ;;  %v2124_v52 = vpop.f32.mrb[15].mxu0 }
 0x20a   : > { %v3561_v53 = vadd.f32 %v2148_v51, %v2147_v49  ;;  %v3563_v54 = vadd.f32 %v2124_v52, %v2123_v50 }
 0x20c   : > { %v2182_v55 = vpop.f32.mrb[16].mxu1  ;;  %v2262_v56 = vpop.f32.mrb[16].mxu0 }
 0x20d   : > { %v2183_v57 = vpop.f32.mrb[17].mxu1  ;;  %v2263_v58 = vpop.f32.mrb[17].mxu0 }
 0x20e   : > { %v2184_v60 = vadd.f32 %v2183_v57, %v2182_v55  ;;  %v2264_v61 = vadd.f32 %v2263_v58, %v2262_v56  ;;  %v692_v56 = vpop.permute.xlu1 %691 }
 0x210   : > { %v956_v0 = vadd.f32 %v2184_v60, %v811_v59  ;;  %v2185_v1 = vpop.f32.mrb[18].mxu1  ;;  %v2265_v2 = vpop.f32.mrb[18].mxu0 }
 0x211   : > { %v2186_v3 = vpop.f32.mrb[19].mxu1  ;;  %v2266_v4 = vpop.f32.mrb[19].mxu0 }
 0x212   : > { %v1101_v6 = vadd.f32 %v2264_v61, %v956_v0  ;;  %v2187_v7 = vadd.f32 %v2186_v3, %v2185_v1  ;;  %v2267_v8 = vadd.f32 %v2266_v4, %v2265_v2  ;;  %v836_v61 = vadd.f32 %v3555_v41, %v692_v56  ;;  %v697_v4 = vpop.permute.xlu0 %696 }
 0x214   : > { %v961_v9 = vadd.f32 %v2187_v7, %v816_v5  ;;  %v2188_v12 = vpop.f32.mrb[20].mxu1  ;;  %v2268_v13 = vpop.f32.mrb[20].mxu0  ;;  %v1195_v15 = vmul.f32 0.2, %v1101_v6  ;;  %vm1179_vm1 = vcmp.ge.f32.partialorder %v1101_v6, 0.0 }
 0x215   : > { %v2189_v18 = vpop.f32.mrb[21].mxu1  ;;  %v2269_v11 = vpop.f32.mrb[21].mxu0 }
 0x216   : > { %v1106_v19 = vadd.f32 %v2267_v8, %v961_v9  ;;  %v2190_v20 = vadd.f32 %v2189_v18, %v2188_v12  ;;  %v2270_v21 = vadd.f32 %v2269_v11, %v2268_v13  ;;  %v1211_v33 = vsel %vm1179_vm1, %v1101_v6, %v1195_v15  ;;  %v702_v11 = vpop.permute.xlu1 %701 }
 0x217   : > { %v841_v9 = vadd.f32 %v3559_v47, %v697_v4 }
 0x218   : > { %vm1180_vm2 = vcmp.ge.f32.partialorder %v1106_v19, 0.0  ;;  %v1196_v25 = vmul.f32 0.2, %v1106_v19  ;;  %v966_v26 = vadd.f32 %v2190_v20, %v821_v14  ;;  %v2191_v27 = vpop.f32.mrb[22].mxu1  ;;  %v2271_v17 = vpop.f32.mrb[22].mxu0 }
 0x219   : > { %v2192_v31 = vpop.f32.mrb[23].mxu1  ;;  %v2272_v32 = vpop.f32.mrb[23].mxu0 }
 0x21a   : > { %v1111_v36 = vadd.f32 %v2270_v21, %v966_v26  ;;  %v2193_v37 = vadd.f32 %v2192_v31, %v2191_v27  ;;  %v2273_v23 = vadd.f32 %v2272_v32, %v2271_v17  ;;  %v1212_v38 = vsel %vm1180_vm2, %v1106_v19, %v1196_v25  ;;  %v707_v17 = vpop.permute.xlu0 %706 }
 0x21b   : > { %v2503_v42 = vpack.c.bf16 %v1212_v38, %v1211_v33  ;;  %v846_v25 = vadd.f32 %v3563_v54, %v702_v11  ;;  %v851_v39 = vadd.f32 %v3541_v10, %v707_v17  ;;  %vm1333_vm2 = vcmask 7168  }
 0x21c   : > { %v971_v43 = vadd.f32 %v2193_v37, %v826_v30  ;;  %v2194_v44 = vpop.f32.mrb[24].mxu1  ;;  %v2274_v45 = vpop.f32.mrb[24].mxu0  ;;  %v1197_v49 = vmul.f32 0.2, %v1111_v36  ;;  %vm1181_vm3 = vcmp.ge.f32.partialorder %v1111_v36, 0.0 }
 0x21d   : > { %v2195_v50 = vpop.f32.mrb[25].mxu1  ;;  %2504 = vmatprep.subr.bf16.mxu1 %v2503_v42  ;;  %v2275_v51 = vpop.f32.mrb[25].mxu0 }
 0x21e   : > { %v1116_v29 = vadd.f32 %v2273_v23, %v971_v43  ;;  %v2196_v52 = vadd.f32 %v2195_v50, %v2194_v44  ;;  %v2276_v55 = vadd.f32 %v2275_v51, %v2274_v45  ;;  %2506 = vmatpush3.bf16.msra.mxu1 %v2503_v42  ;;  %v1213_v35 = vsel %vm1181_vm3, %v1111_v36, %v1197_v49  ;;  %v712_v45 = vpop.permute.xlu1 %711 }
 0x220   : > { %vm1182_vm4 = vcmp.ge.f32.partialorder %v1116_v29, 0.0  ;;  %v1198_v57 = vmul.f32 0.2, %v1116_v29  ;;  %v976_v58 = vadd.f32 %v2196_v52, %v831_v48  ;;  %v2197_v59 = vpop.f32.mrb[26].mxu1  ;;  %v2277_v60 = vpop.f32.mrb[26].mxu0 }
 0x221   : > { %v2198_v62 = vpop.f32.mrb[27].mxu1  ;;  %v2278_v63 = vpop.f32.mrb[27].mxu0 }
 0x222   : > { %v1121_v0 = vadd.f32 %v2276_v55, %v976_v58  ;;  %v2199_v1 = vadd.f32 %v2198_v62, %v2197_v59  ;;  %v2279_v2 = vadd.f32 %v2278_v63, %v2277_v60  ;;  %v1214_v3 = vsel %vm1182_vm4, %v1116_v29, %v1198_v57  ;;  %v717_v58 = vpop.permute.xlu0 %716 }
 0x223   : > { %v2507_v5 = vpack.c.bf16 %v1214_v3, %v1213_v35  ;;  %v856_v55 = vadd.f32 %v3543_v16, %v712_v45 }
 0x224   : > { %v981_v6 = vadd.f32 %v2199_v1, %v836_v61  ;;  %v2200_v7 = vpop.f32.mrb[28].mxu1  ;;  %v2280_v8 = vpop.f32.mrb[28].mxu0  ;;  %v1199_v12 = vmul.f32 0.2, %v1121_v0  ;;  %vm1183_vm5 = vcmp.ge.f32.partialorder %v1121_v0, 0.0 }
 0x225   : > { %v2201_v13 = vpop.f32.mrb[29].mxu1  ;;  %2508 = vmatprep.subr.bf16.mxu1 %v2507_v5  ;;  %v2281_v14 = vpop.f32.mrb[29].mxu0 }
 0x226   : > { %v1126_v41 = vadd.f32 %v2279_v2, %v981_v6  ;;  %v2202_v15 = vadd.f32 %v2201_v13, %v2200_v7  ;;  %v2282_v18 = vadd.f32 %v2281_v14, %v2280_v8  ;;  %2510 = vmatpush3.bf16.msra.mxu1 %v2507_v5  ;;  %v1215_v47 = vsel %vm1183_vm5, %v1121_v0, %v1199_v12  ;;  %v722_v6 = vpop.permute.xlu1 %721  ;;  %v727_v11 = vpop.permute.xlu0 %726 }
 0x227   : > { %v861_v2 = vadd.f32 %v3545_v22, %v717_v58  ;;  %v871_v17 = vadd.f32 %v3549_v34, %v727_v11 }
 0x228   : > { %vm1184_vm6 = vcmp.ge.f32.partialorder %v1126_v41, 0.0  ;;  %v1200_v19 = vmul.f32 0.2, %v1126_v41  ;;  %v986_v20 = vadd.f32 %v2202_v15, %v841_v9  ;;  %v2203_v21 = vpop.f32.mrb[30].mxu1  ;;  %v2283_v24 = vpop.f32.mrb[30].mxu0 }
 0x229   : > { %v2204_v26 = vpop.f32.mrb[31].mxu1  ;;  %v2284_v27 = vpop.f32.mrb[31].mxu0 }
 0x22a   : > { %v1131_v30 = vadd.f32 %v2282_v18, %v986_v20  ;;  %v2205_v31 = vadd.f32 %v2204_v26, %v2203_v21  ;;  %v2285_v32 = vadd.f32 %v2284_v27, %v2283_v24  ;;  %v1216_v33 = vsel %vm1184_vm6, %v1126_v41, %v1200_v19 }
 0x22b   : > { %v2511_v36 = vpack.c.bf16 %v1216_v33, %v1215_v47  ;;  %v866_v41 = vadd.f32 %v3547_v28, %v722_v6  ;;  %v732_v33 = vpop.permute.xlu1 %731 }
 0x22c   : > { %v991_v37 = vadd.f32 %v2205_v31, %v846_v25  ;;  %v2206_v23 = vpop.f32.mrb[32].mxu1  ;;  %v2286_v38 = vpop.f32.mrb[32].mxu0  ;;  %v1201_v42 = vmul.f32 0.2, %v1131_v30  ;;  %vm1185_vm7 = vcmp.ge.f32.partialorder %v1131_v30, 0.0 }
 0x22d   : > { %v2207_v43 = vpop.f32.mrb[33].mxu1  ;;  %2512 = vmatprep.subr.bf16.mxu1 %v2511_v36  ;;  %v2287_v44 = vpop.f32.mrb[33].mxu0 }
 0x22e   : > { %v1136_v54 = vadd.f32 %v2285_v32, %v991_v37  ;;  %v2208_v48 = vadd.f32 %v2207_v43, %v2206_v23  ;;  %v2288_v49 = vadd.f32 %v2287_v44, %v2286_v38  ;;  %2514 = vmatpush3.bf16.msra.mxu1 %v2511_v36  ;;  %v1217_v10 = vsel %vm1185_vm7, %v1131_v30, %v1201_v42 }
 0x22f   : > { %v876_v43 = vadd.f32 %v3553_v40, %v732_v33  ;;  %v1326_v33 = vld [vmem:[#allocation3 + $0x8] sm:$0xff] }
 0x230   : > { %vm1186_vm8 = vcmp.ge.f32.partialorder %v1136_v54, 0.0  ;;  %v1202_v50 = vmul.f32 0.2, %v1136_v54  ;;  %v996_v51 = vadd.f32 %v2208_v48, %v851_v39  ;;  %v2209_v29 = vpop.f32.mrb[34].mxu1  ;;  %v2289_v52 = vpop.f32.mrb[34].mxu0 }
 0x231   : > { %v2210_v56 = vpop.f32.mrb[35].mxu1  ;;  %v2290_v57 = vpop.f32.mrb[35].mxu0 }
 0x232   : > { %v1141_v59 = vadd.f32 %v2288_v49, %v996_v51  ;;  %v2211_v60 = vadd.f32 %v2210_v56, %v2209_v29  ;;  %v2291_v61 = vadd.f32 %v2290_v57, %v2289_v52  ;;  %v1218_v62 = vsel %vm1186_vm8, %v1136_v54, %v1202_v50  ;;  %v737_v54 = vpop.permute.xlu0 %736 }
 0x233   : > { %v2515_v63 = vpack.c.bf16 %v1218_v62, %v1217_v10  ;;  %v881_v57 = vadd.f32 %v3557_v46, %v737_v54  ;;  %v1368_v54 = vld [vmem:[#allocation14] sm:$0xff] (!%p2065_p9) }
 0x234   : > { %v1001_v35 = vadd.f32 %v2211_v60, %v856_v55  ;;  %v2212_v0 = vpop.f32.mrb[36].mxu1  ;;  %v2292_v1 = vpop.f32.mrb[36].mxu0  ;;  %v1203_v3 = vmul.f32 0.2, %v1141_v59  ;;  %vm1187_vm9 = vcmp.ge.f32.partialorder %v1141_v59, 0.0 }
 0x235   : > { %v2213_v4 = vpop.f32.mrb[37].mxu1  ;;  %2516 = vmatprep.subr.bf16.mxu1 %v2515_v63  ;;  %v2293_v5 = vpop.f32.mrb[37].mxu0 }
 0x236   : > { %v1146_v16 = vadd.f32 %v2291_v61, %v1001_v35  ;;  %v2214_v7 = vadd.f32 %v2213_v4, %v2212_v0  ;;  %v2294_v8 = vadd.f32 %v2293_v5, %v2292_v1  ;;  %2518 = vmatpush3.bf16.msra.mxu1 %v2515_v63  ;;  %v1219_v22 = vsel %vm1187_vm9, %v1141_v59, %v1203_v3  ;;  %v742_v60 = vpop.permute.xlu1 %741 }
 0x238   : > { %vm1188_vm10 = vcmp.ge.f32.partialorder %v1146_v16, 0.0  ;;  %v1204_v9 = vmul.f32 0.2, %v1146_v16  ;;  %v1006_v12 = vadd.f32 %v2214_v7, %v861_v2  ;;  %v2215_v13 = vpop.f32.mrb[38].mxu1  ;;  %v2295_v14 = vpop.f32.mrb[38].mxu0  ;;  %v886_v2 = vadd.f32 %v3561_v53, %v742_v60 }
 0x239   : > { %v2216_v15 = vpop.f32.mrb[39].mxu1  ;;  %v2296_v18 = vpop.f32.mrb[39].mxu0 }
 0x23a   : > { %v1151_v19 = vadd.f32 %v2294_v8, %v1006_v12  ;;  %v2217_v20 = vadd.f32 %v2216_v15, %v2215_v13  ;;  %v2297_v21 = vadd.f32 %v2296_v18, %v2295_v14  ;;  %v1220_v24 = vsel %vm1188_vm10, %v1146_v16, %v1204_v9  ;;  %v1228_v18 = vld [vmem:[#allocation12 + $0x8] sm:$0xff] }
 0x23b   : > { %v2519_v25 = vpack.c.bf16 %v1220_v24, %v1219_v22  ;;  %v451_v22 = vlaneseq }
 0x23c   : > { %v1011_v26 = vadd.f32 %v2217_v20, %v866_v41  ;;  %v2218_v27 = vpop.f32.mrb[40].mxu1  ;;  %v2298_v47 = vpop.f32.mrb[40].mxu0  ;;  %v1205_v30 = vmul.f32 0.2, %v1151_v19  ;;  %vm1189_vm11 = vcmp.ge.f32.partialorder %v1151_v19, 0.0 }
 0x23d   : > { %v2219_v31 = vpop.f32.mrb[41].mxu1  ;;  %2520 = vmatprep.subr.bf16.mxu1 %v2519_v25  ;;  %v2299_v32 = vpop.f32.mrb[41].mxu0  ;;  %v452_v11 = vand.u32 127, %v451_v22 }
 0x23e   : > { %v1156_v28 = vadd.f32 %v2297_v21, %v1011_v26  ;;  %v2220_v36 = vadd.f32 %v2219_v31, %v2218_v27  ;;  %v2300_v37 = vadd.f32 %v2299_v32, %v2298_v47  ;;  %2522 = vmatpush3.bf16.msra.mxu1 %v2519_v25  ;;  %v1221_v34 = vsel %vm1189_vm11, %v1151_v19, %v1205_v30  ;;  %v1239_v19 = vpop.permute.xlu1 %1238  ;;  %v1234_v25 = vpop.permute.xlu0 %1233 }
 0x23f   : > { %vm453_vm1 = vcmp.lt.s32.totalorder %v452_v11, 2  ;;  %v3090_v21 = vmov 0.0  }
 0x240   : > { %vm1190_vm12 = vcmp.ge.f32.partialorder %v1156_v28, 0.0  ;;  %v1206_v23 = vmul.f32 0.2, %v1156_v28  ;;  %v1016_v38 = vadd.f32 %v2220_v36, %v871_v17  ;;  %v2221_v39 = vpop.f32.mrb[42].mxu1  ;;  %v2301_v42 = vpop.f32.mrb[42].mxu0  ;;  %v3579_v24 = vsel %vm453_vm1, 1.0, %v3090_v21 }
 0x241   : > { %v2222_v44 = vpop.f32.mrb[43].mxu1  ;;  %v2302_v45 = vpop.f32.mrb[43].mxu0 }
 0x242   : > { %v1161_v48 = vadd.f32 %v2300_v37, %v1016_v38  ;;  %v2223_v49 = vadd.f32 %v2222_v44, %v2221_v39  ;;  %v2303_v50 = vadd.f32 %v2302_v45, %v2301_v42  ;;  %v1222_v51 = vsel %vm1190_vm12, %v1156_v28, %v1206_v23  ;;  %v1325_v28 = vld [vmem:[#allocation3] sm:$0xff]  ;;  %v1336_v39 = vld [vmem:[#allocation4] sm:$0xff]  ;;  %v1337_v44 = vld [vmem:[#allocation4 + $0x8] sm:$0xff] }
 0x243   : > { %v2523_v29 = vpack.c.bf16 %v1222_v51, %v1221_v34 }
 0x244   : > { %v1021_v52 = vadd.f32 %v2223_v49, %v876_v43  ;;  %v2224_v55 = vpop.f32.mrb[44].mxu1  ;;  %v2304_v56 = vpop.f32.mrb[44].mxu0  ;;  %v1207_v10 = vmul.f32 0.2, %v1161_v48  ;;  %vm1191_vm13 = vcmp.ge.f32.partialorder %v1161_v48, 0.0  ;;  %v1369_v49 = vld [vmem:[#allocation14 + $0x8] sm:$0xff] (!%p2065_p9) }
 0x245   : > { %v2225_v58 = vpop.f32.mrb[45].mxu1  ;;  %2524 = vmatprep.subr.bf16.mxu1 %v2523_v29  ;;  %v2305_v59 = vpop.f32.mrb[45].mxu0 }
 0x246   : > { %v1166_v40 = vadd.f32 %v2303_v50, %v1021_v52  ;;  %v2226_v61 = vadd.f32 %v2225_v58, %v2224_v55  ;;  %v2306_v62 = vadd.f32 %v2305_v59, %v2304_v56  ;;  %2526 = vmatpush3.bf16.msra.mxu1 %v2523_v29  ;;  %v1223_v46 = vsel %vm1191_vm13, %v1161_v48, %v1207_v10 }
 0x247   : > { %v3092_v48 = vmov (!%p2065_p9), 0  }
 0x248   : > { %vm1192_vm14 = vcmp.ge.f32.partialorder %v1166_v40, 0.0  ;;  %v1208_v63 = vmul.f32 0.2, %v1166_v40  ;;  %v1026_v35 = vadd.f32 %v2226_v61, %v881_v57  ;;  %v2227_v0 = vpop.f32.mrb[46].mxu1  ;;  %v2307_v1 = vpop.f32.mrb[46].mxu0  ;;  %2737 = vset.pattern.permute.xlu1 (!%p2065_p9), %v3092_v48  ;;  %2736 = vset.pattern.permute.xlu0 (!%p2065_p9), %v3092_v48 }
 0x249   : > { %v2228_v3 = vpop.f32.mrb[47].mxu1  ;;  %v2308_v4 = vpop.f32.mrb[47].mxu0 }
 0x24a   : > { %v1171_v5 = vadd.f32 %v2306_v62, %v1026_v35  ;;  %v2229_v6 = vadd.f32 %v2228_v3, %v2227_v0  ;;  %v2309_v16 = vadd.f32 %v2308_v4, %v2307_v1  ;;  %v1224_v7 = vsel %vm1192_vm14, %v1166_v40, %v1208_v63 }
 0x24b   : > { %v2527_v8 = vpack.c.bf16 %v1224_v7, %v1223_v46 }
 0x24c   : > { %v1031_v9 = vadd.f32 %v2229_v6, %v886_v2  ;;  %v1209_v12 = vmul.f32 0.2, %v1171_v5  ;;  %vm1193_vm15 = vcmp.ge.f32.partialorder %v1171_v5, 0.0 }
 0x24d   : > { %2528 = vmatprep.subr.bf16.mxu1 %v2527_v8 }
 0x24e   : > { %v1176_v13 = vadd.f32 %v2309_v16, %v1031_v9  ;;  %2530 = vmatpush3.bf16.msra.mxu1 %v2527_v8  ;;  %v1225_v41 = vsel %vm1193_vm15, %v1171_v5, %v1209_v12  ;;  %v3094_v5 = vmov (!%p2065_p9), 2   ;;  %v1605_v9 = vld [vmem:[#allocation15 + $0x8] sm:$0xff] (!%p2065_p9) }
 0x24f   : > { %v1609_v12 = vld [vmem:[#allocation15 + $0x28] sm:$0xff] (!%p2065_p9)  ;;  %1700 = vmatprep.mubr.f32.mxu0 (!%p2065_p9), %v1605_v9 }
 0x250   : > { %vm1194_vm0 = vcmp.ge.f32.partialorder %v1176_v13, 0.0  ;;  %v1210_v14 = vmul.f32 0.2, %v1176_v13 }
 0x252   : > { %v1226_v15 = vsel %vm1194_vm0, %v1176_v13, %v1210_v14  ;;  %v3590_v13 = vld [vmem:[#allocation17] sm:$0xff] (!%p2065_p9)  ;;  %v3593_v14 = vld [vmem:[#allocation17 + $0x10] sm:$0xff] (!%p2065_p9) }
 0x253   : > { %v2531_v53 = vpack.c.bf16 %v1226_v15, %v1225_v41  ;;  %v3595_v41 = vld [vmem:[#allocation17 + $0x8] sm:$0xff] (!%p2065_p9)  ;;  %v3599_v15 = vld [vmem:[#allocation17 + $0x18] sm:$0xff] (!%p2065_p9) }
 0x255   : > { %2532 = vmatprep.subr.bf16.mxu1 %v2531_v53 }
 0x256   : > { %2534 = vmatpush3.bf16.msra.mxu1 %v2531_v53 }
 0x259   : > { %2405 = vmatmul.mubr.f32.vlgmr.msra.gmra.mrb[48].mxu1 %v1228_v18 }
 0x25a   : > { %1710 = vmatprep.mubr.f32.mxu1 (!%p2065_p9), %v1609_v12 }
 0x32c   : > { %v2406_v20 = vpop.f32.mrb[48].mxu1 }
 0x32d   : > { %v1313_v26 = vadd.f32 %v2406_v20, %v1239_v19  ;;  %v1307_v27 = vpop.f32.mrb[49].mxu1 }
 0x32e   : > { %v1308_v47 = vadd.f32 %v1307_v27, %v1234_v25 }
 0x32f   : > { %1322 = vst [vmem:[%s1320_s15 + $0xc8] sm:$0xff] %v1313_v26  ;;  %v1324_v17 = vmul.f32 %v3579_v24, %v1313_v26 }
 0x330   : > { %1321 = vst [vmem:[%s1320_s15] sm:$0xff] %v1308_v47  ;;  %v1323_v30 = vmul.f32 %v3579_v24, %v1308_v47 }
 0x331   : > { %1329 = vadd.xlane.f32.xlu1 %v1324_v17  ;;  %v1339_v32 = vmul.f32 %v1324_v17, %v1313_v26 }
 0x332   : > { %1327 = vadd.xlane.f32.xlu0 %v1323_v30  ;;  %v1338_v31 = vmul.f32 %v1323_v30, %v1308_v47 }
 0x336   : > { %1340 = vadd.xlane.f32.xlu0 %v1338_v31 }
 0x337   : > { %v1400_v53 = vld [vmem:[#allocation2 + $0x50] sm:$0xff] (!%p2065_p9)  ;;  %v1392_v18 = vld [vmem:[#allocation2] sm:$0xff] (!%p2065_p9)  ;;  %v1401_v11 = vld [vmem:[#allocation2 + $0x58] sm:$0xff] (!%p2065_p9) }
 0x338   : > { %v1393_v19 = vld [vmem:[#allocation2 + $0x8] sm:$0xff] (!%p2065_p9)  ;;  %v1402_v21 = vld [vmem:[#allocation2 + $0x60] sm:$0xff] (!%p2065_p9)  ;;  %v1394_v25 = vld [vmem:[#allocation2 + $0x10] sm:$0xff] (!%p2065_p9) }
 0x339   : > { %v1403_v26 = vld [vmem:[#allocation2 + $0x68] sm:$0xff] (!%p2065_p9)  ;;  %v1395_v27 = vld [vmem:[#allocation2 + $0x18] sm:$0xff] (!%p2065_p9) }
 0x33a   : > { %1342 = vadd.xlane.f32.xlu0 %v1339_v32  ;;  %v1404_v47 = vld [vmem:[#allocation2 + $0x78] sm:$0xff] (!%p2065_p9)  ;;  %v1396_v17 = vld [vmem:[#allocation2 + $0x28] sm:$0xff] (!%p2065_p9)  ;;  %v1417_v32 = vld [vmem:[#allocation2 + $0x120] sm:$0xff] (!%p2065_p9) }
 0x33b   : > { %v1416_v30 = vld [vmem:[#allocation2 + $0x118] sm:$0xff] (!%p2065_p9)  ;;  %v1408_v31 = vld [vmem:[#allocation2 + $0xc8] sm:$0xff] (!%p2065_p9) }
 0x350   : > { %1372 = vrot.lane.b32.xlu0 (!%p2065_p9), %v1368_v54, %s3091_s21 }
 0x354   : > { %1374 = vrot.lane.b32.xlu0 (!%p2065_p9), %v1369_v49, %s3091_s21 }
 0x3be   : > { %v1330_v36 = vpop.xlane.xlu1 %1329 }
 0x3bf   : > { %v1332_v37 = vadd.f32 %v1330_v36, %v1326_v33  ;;  %v1328_v23 = vpop.xlane.xlu0 %1327  ;;  %v1409_v33 = vld [vmem:[#allocation2 + $0xd0] sm:$0xff] (!%p2065_p9) }
 0x3c0   : > { %v1331_v38 = vadd.f32 %v1328_v23, %v1325_v28  ;;  %v1405_v28 = vld [vmem:[#allocation2 + $0x80] sm:$0xff] (!%p2065_p9)  ;;  %v1397_v36 = vld [vmem:[#allocation2 + $0x30] sm:$0xff] (!%p2065_p9) }
 0x3c1   : > { %1335 = vst.msk [vmem:[#allocation3 + $0x8] sm:$0xff] %vm1333_vm2, %v1332_v37  ;;  %v1406_v37 = vld [vmem:[#allocation2 + $0x88] sm:$0xff] (!%p2065_p9) }
 0x3c2   : > { %1334 = vst.msk [vmem:[#allocation3] sm:$0xff] %vm1333_vm2, %v1331_v38 }
 0x3c3   : > { %v1341_v42 = vpop.xlane.xlu0 %1340 }
 0x3c4   : > { %v1344_v43 = vadd.f32 %v1341_v42, %v1336_v39  ;;  %1351 = sbr.rel (%p2065_p9) target bundleno = 1984 (0x7c0), region = 96 }
 0x3c6   : > { %1346 = vst.msk [vmem:[#allocation4] sm:$0xff] %vm1333_vm2, %v1344_v43  ;;  %v1398_v43 = vld [vmem:[#allocation2 + $0x38] sm:$0xff] (!%p2065_p9) }
 0x3c7   : > { %v1343_v45 = vpop.xlane.xlu0 %1342 }
 0x3c8   : > { %v1345_v34 = vadd.f32 %v1343_v45, %v1337_v44  ;;  %v1353_v52 = vld [vmem:[#allocation3 + $0x8] sm:$0xff] (!%p2065_p9)  ;;  %v1407_v44 = vld [vmem:[#allocation2 + $0x90] sm:$0xff] (!%p2065_p9)  ;;  %v1399_v45 = vld [vmem:[#allocation2 + $0x40] sm:$0xff] (!%p2065_p9) }
 0x3c9   : > { %v1352_v50 = vld [vmem:[#allocation3] sm:$0xff] (!%p2065_p9)  ;;  %v1355_v57 = vmul.f32 (!%p2065_p9), 0.02, %v1353_v52 }
 0x3ca   : > { %1347 = vst.msk [vmem:[#allocation4 + $0x8] sm:$0xff] %vm1333_vm2, %v1345_v34  ;;  %v1354_v51 = vmul.f32 (!%p2065_p9), 0.02, %v1352_v50  ;;  %v1410_v50 = vld [vmem:[#allocation2 + $0xd8] sm:$0xff] (!%p2065_p9) }
 0x3cb   : > { %v1361_v60 = vmul.f32 %v1355_v57, %v1355_v57  ;;  %v1373_v35 = vpop.permute.xlu0 %1372 }
 0x3cc   : > { %v1360_v56 = vmul.f32 %v1354_v51, %v1354_v51 }
 0x3cd   : > { %v1356_v29 = vld [vmem:[#allocation4] sm:$0xff] }
 0x3ce   : > { %v1358_v55 = vmul.f32 0.02, %v1356_v29  ;;  %v1419_v29 = vld [vmem:[#allocation2 + $0x130] sm:$0xff] }
 0x3cf   : > { %v1375_v3 = vpop.permute.xlu0 %1374 }
 0x3d0   : > { %v1362_v58 = vsub.f32 %v1358_v55, %v1360_v56  ;;  %v1411_v56 = vld [vmem:[#allocation2 + $0xe0] sm:$0xff] }
 0x3d1   : > { %v1357_v10 = vld [vmem:[#allocation4 + $0x8] sm:$0xff] }
 0x3d2   : > { %v1359_v59 = vmul.f32 0.02, %v1357_v10  ;;  %v1364_v40 = vadd.f32 1e-05, %v1362_v58  ;;  %v1412_v58 = vld [vmem:[#allocation2 + $0xf0] sm:$0xff] }
 0x3d4   : > { %v1363_v61 = vsub.f32 %v1359_v59, %v1361_v60  ;;  %2749 = vrsqrt.f32 %v1364_v40 }
 0x3d6   : > { %v1365_v62 = vadd.f32 1e-05, %v1363_v61  ;;  %v1421_v61 = vld [vmem:[#allocation2 + $0x148] sm:$0xff] }
 0x3d8   : > { %2751 = vrsqrt.f32 %v1365_v62  ;;  %v1413_v62 = vld [vmem:[#allocation2 + $0xf8] sm:$0xff] }
 0x3de   : > { %v2750_v63 = vpop.eup %2749 }
 0x3df   : > { %v1378_v0 = vmul.f32 %v2750_v63, %v1373_v35  ;;  %v1422_v63 = vld [vmem:[#allocation2 + $0x150] sm:$0xff] }
 0x3e1   : > { %1426 = vperm.xlu0 %2736, %v1378_v0   ;;  %v1380_v2 = vmul.f32 %v1378_v0, %v1354_v51 }
 0x3e2   : > { %v2752_v1 = vpop.eup %2751 }
 0x3e3   : > { %v1379_v4 = vmul.f32 %v2752_v1, %v1375_v3  ;;  %1384 = vrot.lane.b32.xlu1 %v1380_v2, %s3093_s11 }
 0x3e5   : > { %v1381_v46 = vmul.f32 %v1379_v4, %v1355_v57  ;;  %2739 = vset.pattern.permute.xlu0 %v3094_v5  ;;  %v1420_v57 = vld [vmem:[#allocation2 + $0x140] sm:$0xff] }
 0x3e7   : > { %1386 = vrot.lane.b32.xlu1 %v1381_v46, %s3093_s11 }
 0x3eb   : > { %1431 = vperm.xlu1 %2737, %v1379_v4  }
 0x3ef   : > { %2738 = vset.pattern.permute.xlu1 %v3094_v5 }
 0x455   : > { %v1385_v6 = vpop.permute.xlu1 %1384 }
 0x456   : > { %v1390_v16 = vsub.f32 %v1368_v54, %v1385_v6  ;;  %v1418_v54 = vld [vmem:[#allocation2 + $0x128] sm:$0xff] }
 0x458   : > { %1468 = vperm.xlu1 %2738, %v1390_v16   ;;  %v1414_v16 = vld [vmem:[#allocation2 + $0x100] sm:$0xff] }
 0x459   : > { %v1387_v7 = vpop.permute.xlu1 %1386 }
 0x45a   : > { %v1391_v8 = vsub.f32 %v1369_v49, %v1387_v7  ;;  %v1423_v7 = vld [vmem:[#allocation2 + $0x158] sm:$0xff] }
 0x45c   : > { %1473 = vperm.xlu0 %2739, %v1391_v8   ;;  %2740 = vset.pattern.permute.xlu1 %v3092_v48  ;;  %v1415_v8 = vld [vmem:[#allocation2 + $0x108] sm:$0xff] }
 0x45d   : > { %1618 = vperm.xlu1 %2740, %v3590_v13  }
 0x460   : > { %2741 = vset.pattern.permute.xlu0 %v3092_v48  ;;  %v1427_v20 = vpop.permute.xlu0 %1426 }
 0x461   : > { %1628 = vperm.xlu0 %2741, %v3593_v14   ;;  %1623 = vperm.xlu1 %2740, %v3595_v41   ;;  %v1442_v23 = vmul.f32 %v1427_v20, %v1400_v53  ;;  %v1434_v38 = vmul.f32 %v1427_v20, %v1392_v18  ;;  %v1443_v39 = vmul.f32 %v1427_v20, %v1401_v11 }
 0x462   : > { %v1435_v42 = vmul.f32 %v1427_v20, %v1393_v19  ;;  %v1444_v49 = vmul.f32 %v1427_v20, %v1402_v21  ;;  %v1436_v51 = vmul.f32 %v1427_v20, %v1394_v25  ;;  %v1445_v52 = vmul.f32 %v1427_v20, %v1403_v26 }
 0x463   : > { %v1437_v55 = vmul.f32 %v1427_v20, %v1395_v27  ;;  %v3602_v10 = vmul.f32 %v1427_v20, %v1404_v47  ;;  %v3604_v59 = vmul.f32 %v1427_v20, %v1396_v17  ;;  %v3606_v60 = vmul.f32 %v1427_v20, %v1405_v28 }
 0x464   : > { %v3608_v40 = vmul.f32 %v1427_v20, %v1397_v36  ;;  %v3610_v35 = vmul.f32 %v1427_v20, %v1406_v37  ;;  %v3612_v0 = vmul.f32 %v1427_v20, %v1398_v43  ;;  %v3614_v1 = vmul.f32 %v1427_v20, %v1407_v44 }
 0x465   : > { %1633 = vperm.xlu1 %2740, %v3599_v15   ;;  %v3616_v2 = vmul.f32 %v1427_v20, %v1399_v45 }
 0x46a   : > { %v1432_v34 = vpop.permute.xlu1 %1431 }
 0x46b   : > { %v1458_v3 = vmul.f32 %v1432_v34, %v1416_v30  ;;  %v1450_v4 = vmul.f32 %v1432_v34, %v1408_v31  ;;  %v1459_v46 = vmul.f32 %v1432_v34, %v1417_v32  ;;  %v1451_v6 = vmul.f32 %v1432_v34, %v1409_v33 }
 0x46c   : > { %v1460_v9 = vmul.f32 %v1432_v34, %v1418_v54  ;;  %v1452_v12 = vmul.f32 %v1432_v34, %v1410_v50  ;;  %v3618_v53 = vmul.f32 %v1432_v34, %v1419_v29  ;;  %v3620_v18 = vmul.f32 %v1432_v34, %v1411_v56 }
 0x46d   : > { %v3622_v11 = vmul.f32 %v1432_v34, %v1420_v57  ;;  %v3624_v19 = vmul.f32 %v1432_v34, %v1412_v58  ;;  %v3626_v21 = vmul.f32 %v1432_v34, %v1421_v61  ;;  %v3628_v20 = vmul.f32 %v1432_v34, %v1413_v62 }
 0x46e   : > { %v3632_v26 = vmul.f32 %v1432_v34, %v1422_v63  ;;  %v3634_v27 = vmul.f32 %v1432_v34, %v1414_v16  ;;  %v3636_v47 = vmul.f32 %v1432_v34, %v1423_v7  ;;  %v3638_v17 = vmul.f32 %v1432_v34, %v1415_v8 }
 0x4d7   : > { %v3630_v25 = vpop.permute.xlu1 %1468 }
 0x4d8   : > { %v1484_v30 = vadd.f32 %v3630_v25, %v1442_v23  ;;  %v1476_v31 = vadd.f32 %v3630_v25, %v1434_v38  ;;  %v1485_v32 = vadd.f32 %v3630_v25, %v1443_v39  ;;  %v1477_v33 = vadd.f32 %v3630_v25, %v1435_v42 }
 0x4d9   : > { %v1486_v28 = vadd.f32 %v3630_v25, %v1444_v49  ;;  %v1478_v36 = vadd.f32 %v3630_v25, %v1436_v51  ;;  %v1487_v37 = vadd.f32 %v3630_v25, %v1445_v52  ;;  %v3648_v43 = vadd.f32 %v3630_v25, %v1437_v55 }
 0x4da   : > { %vm1516_vm3 = vcmp.ge.f32.partialorder %v1484_v30, 0.0  ;;  %v1548_v44 = vmul.f32 0.2, %v1484_v30  ;;  %vm1508_vm4 = vcmp.ge.f32.partialorder %v1476_v31, 0.0  ;;  %v1540_v45 = vmul.f32 0.2, %v1476_v31 }
 0x4db   : > { %v3650_v23 = vpop.permute.xlu0 %1473  ;;  %vm1517_vm5 = vcmp.ge.f32.partialorder %v1485_v32, 0.0  ;;  %v1549_v38 = vmul.f32 0.2, %v1485_v32  ;;  %vm1509_vm6 = vcmp.ge.f32.partialorder %v1477_v33, 0.0  ;;  %v1541_v39 = vmul.f32 0.2, %v1477_v33 }
 0x4dc   : > { %v1500_v42 = vadd.f32 %v3650_v23, %v1458_v3  ;;  %v1580_v34 = vsel %vm1516_vm3, %v1484_v30, %v1548_v44  ;;  %v1492_v54 = vadd.f32 %v3650_v23, %v1450_v4  ;;  %v1572_v49 = vsel %vm1508_vm4, %v1476_v31, %v1540_v45 }
 0x4dd   : > { %v1501_v50 = vadd.f32 %v3650_v23, %v1459_v46  ;;  %v1581_v51 = vsel %vm1517_vm5, %v1485_v32, %v1549_v38  ;;  %v1493_v29 = vadd.f32 %v3650_v23, %v1451_v6  ;;  %v1573_v52 = vsel %vm1509_vm6, %v1477_v33, %v1541_v39 }
 0x4de   : > { %vm1532_vm7 = vcmp.ge.f32.partialorder %v1500_v42, 0.0  ;;  %v1564_v55 = vmul.f32 0.2, %v1500_v42  ;;  %vm1524_vm8 = vcmp.ge.f32.partialorder %v1492_v54, 0.0  ;;  %v1556_v56 = vmul.f32 0.2, %v1492_v54 }
 0x4df   : > { %vm1533_vm9 = vcmp.ge.f32.partialorder %v1501_v50, 0.0  ;;  %v1565_v57 = vmul.f32 0.2, %v1501_v50  ;;  %vm1525_vm10 = vcmp.ge.f32.partialorder %v1493_v29, 0.0  ;;  %v1557_v58 = vmul.f32 0.2, %v1493_v29 }
 0x4e0   : > { %v1596_v61 = vsel %vm1532_vm7, %v1500_v42, %v1564_v55  ;;  %v1588_v62 = vsel %vm1524_vm8, %v1492_v54, %v1556_v56  ;;  %v1502_v63 = vadd.f32 %v3650_v23, %v1460_v9  ;;  %vm1518_vm11 = vcmp.ge.f32.partialorder %v1486_v28, 0.0 }
 0x4e1   : > { %v2535_v3 = vpack.c.bf16 %v1596_v61, %v1580_v34  ;;  %v2537_v4 = vpack.c.bf16 %v1588_v62, %v1572_v49  ;;  %v1597_v46 = vsel %vm1533_vm9, %v1501_v50, %v1565_v57  ;;  %v1589_v16 = vsel %vm1525_vm10, %v1493_v29, %v1557_v58 }
 0x4e2   : > { %v2539_v7 = vpack.c.bf16 %v1597_v46, %v1581_v51  ;;  %v2541_v6 = vpack.c.bf16 %v1589_v16, %v1573_v52  ;;  %vm1534_vm12 = vcmp.ge.f32.partialorder %v1502_v63, 0.0  ;;  %v1550_v8 = vmul.f32 0.2, %v1486_v28 }
 0x4e3   : > { %2536 = vmatprep.subr.bf16.mxu0 %v2535_v3  ;;  %2583 = vmatprep.subr.bf16.mxu1 %v2535_v3  ;;  %v1566_v30 = vmul.f32 0.2, %v1502_v63  ;;  %v1494_v31 = vadd.f32 %v3650_v23, %v1452_v12  ;;  %vm1510_vm13 = vcmp.ge.f32.partialorder %v1478_v36, 0.0  ;;  %v1542_v32 = vmul.f32 0.2, %v1478_v36 }
 0x4e4   : > { %2538 = vmatpush3.bf16.msra.mxu0 %v2537_v4  ;;  %2591 = vmatpush3.bf16.msra.mxu1 %v2537_v4  ;;  %v1582_v9 = vsel %vm1518_vm11, %v1486_v28, %v1550_v8  ;;  %v1503_v33 = vadd.f32 %v3650_v23, %v3618_v53  ;;  %vm1519_vm14 = vcmp.ge.f32.partialorder %v1487_v37, 0.0  ;;  %v1551_v44 = vmul.f32 0.2, %v1487_v37 }
 0x4e5   : > { %2540 = vmatprep.subr.bf16.mxu0 %v2539_v7  ;;  %2584 = vmatprep.subr.bf16.mxu1 %v2539_v7  ;;  %v1598_v45 = vsel %vm1534_vm12, %v1502_v63, %v1566_v30  ;;  %vm1526_vm15 = vcmp.ge.f32.partialorder %v1494_v31, 0.0  ;;  %v1558_v38 = vmul.f32 0.2, %v1494_v31  ;;  %v1574_v39 = vsel %vm1510_vm13, %v1478_v36, %v1542_v32 }
 0x4e6   : > { %v2543_v42 = vpack.c.bf16 %v1598_v45, %v1582_v9  ;;  %vm1535_vm0 = vcmp.ge.f32.partialorder %v1503_v33, 0.0  ;;  %v1567_v12 = vmul.f32 0.2, %v1503_v33  ;;  %v1583_v34 = vsel %vm1519_vm14, %v1487_v37, %v1551_v44 }
 0x4e7   : > { %v1590_v54 = vsel %vm1526_vm15, %v1494_v31, %v1558_v38  ;;  %v1495_v28 = vadd.f32 %v3650_v23, %v3620_v18  ;;  %vm1511_vm1 = vcmp.ge.f32.partialorder %v3648_v43, 0.0  ;;  %v1543_v53 = vmul.f32 0.2, %v3648_v43 }
 0x4e8   : > { %2542 = vmatpush3.bf16.msra.mxu0 %v2541_v6  ;;  %2592 = vmatpush3.bf16.msra.mxu1 %v2541_v6  ;;  %v2545_v49 = vpack.c.bf16 %v1590_v54, %v1574_v39  ;;  %v1599_v50 = vsel %vm1535_vm0, %v1503_v33, %v1567_v12  ;;  %v1488_v51 = vadd.f32 %v3630_v25, %v3602_v10 }
 0x4e9   : > { %2544 = vmatprep.subr.bf16.mxu0 %v2543_v42  ;;  %2585 = vmatprep.subr.bf16.mxu1 %v2543_v42  ;;  %v2547_v36 = vpack.c.bf16 %v1599_v50, %v1583_v34  ;;  %vm1527_vm2 = vcmp.ge.f32.partialorder %v1495_v28, 0.0  ;;  %v1559_v37 = vmul.f32 0.2, %v1495_v28  ;;  %v1575_v29 = vsel %vm1511_vm1, %v3648_v43, %v1543_v53 }
 0x4ea   : > { %v1504_v18 = vadd.f32 %v3650_v23, %v3622_v11  ;;  %vm1520_vm3 = vcmp.ge.f32.partialorder %v1488_v51, 0.0  ;;  %v1552_v52 = vmul.f32 0.2, %v1488_v51  ;;  %v1480_v55 = vadd.f32 %v3630_v25, %v3604_v59 }
 0x4eb   : > { %v1591_v56 = vsel %vm1527_vm2, %v1495_v28, %v1559_v37  ;;  %v1496_v57 = vadd.f32 %v3650_v23, %v3624_v19  ;;  %v1489_v10 = vadd.f32 %v3630_v25, %v3606_v60  ;;  %v1505_v58 = vadd.f32 %v3650_v23, %v3626_v21 }
 0x4ec   : > { %2546 = vmatpush3.bf16.msra.mxu0 %v2545_v49  ;;  %2593 = vmatpush3.bf16.msra.mxu1 %v2545_v49  ;;  %v2549_v43 = vpack.c.bf16 %v1591_v56, %v1575_v29  ;;  %vm1536_vm4 = vcmp.ge.f32.partialorder %v1504_v18, 0.0  ;;  %v1568_v11 = vmul.f32 0.2, %v1504_v18  ;;  %v1584_v61 = vsel %vm1520_vm3, %v1488_v51, %v1552_v52  ;;  %v1607_v56 = vld [vmem:[#allocation15 + $0x18] sm:$0xff] }
 0x4ed   : > { %2548 = vmatprep.subr.bf16.mxu0 %v2547_v36  ;;  %2586 = vmatprep.subr.bf16.mxu1 %v2547_v36  ;;  %vm1512_vm5 = vcmp.ge.f32.partialorder %v1480_v55, 0.0  ;;  %vm1528_vm6 = vcmp.ge.f32.partialorder %v1496_v57, 0.0  ;;  %v1544_v59 = vmul.f32 0.2, %v1480_v55  ;;  %v1560_v62 = vmul.f32 0.2, %v1496_v57 }
 0x4ee   : > { %v1600_v63 = vsel %vm1536_vm4, %v1504_v18, %v1568_v11  ;;  %vm1521_vm7 = vcmp.ge.f32.partialorder %v1489_v10, 0.0  ;;  %vm1537_vm8 = vcmp.ge.f32.partialorder %v1505_v58, 0.0  ;;  %v1553_v19 = vmul.f32 0.2, %v1489_v10  ;;  %v1629_v11 = vpop.permute.xlu0 %1628 }
 0x4ef   : > { %v2551_v60 = vpack.c.bf16 %v1600_v63, %v1584_v61  ;;  %v1576_v3 = vsel %vm1512_vm5, %v1480_v55, %v1544_v59  ;;  %v1592_v4 = vsel %vm1528_vm6, %v1496_v57, %v1560_v62  ;;  %v1569_v21 = vmul.f32 0.2, %v1505_v58  ;;  %v1611_v57 = vld [vmem:[#allocation15 + $0x38] sm:$0xff] }
 0x4f0   : > { %2550 = vmatpush3.bf16.msra.mxu0 %v2549_v43  ;;  %2594 = vmatpush3.bf16.msra.mxu1 %v2549_v43  ;;  %v2553_v46 = vpack.c.bf16 %v1592_v4, %v1576_v3  ;;  %v1585_v16 = vsel %vm1521_vm7, %v1489_v10, %v1553_v19  ;;  %v1481_v7 = vadd.f32 %v3630_v25, %v3608_v40  ;;  %v1606_v10 = vld [vmem:[#allocation15 + $0x10] sm:$0xff]  ;;  %v1619_v43 = vpop.permute.xlu1 %1618 }
 0x4f1   : > { %2552 = vmatprep.subr.bf16.mxu0 %v2551_v60  ;;  %2587 = vmatprep.subr.bf16.mxu1 %v2551_v60  ;;  %v1601_v6 = vsel %vm1537_vm8, %v1505_v58, %v1569_v21  ;;  %v1497_v8 = vadd.f32 %v3650_v23, %v3628_v20  ;;  %v1490_v30 = vadd.f32 %v3630_v25, %v3610_v35  ;;  %v1610_v58 = vld [vmem:[#allocation15 + $0x30] sm:$0xff] }
 0x4f2   : > { %v2555_v31 = vpack.c.bf16 %v1601_v6, %v1585_v16  ;;  %vm1513_vm9 = vcmp.ge.f32.partialorder %v1481_v7, 0.0  ;;  %v1545_v32 = vmul.f32 0.2, %v1481_v7  ;;  %v1506_v9 = vadd.f32 %v3650_v23, %v3632_v26 }
 0x4f3   : > { %vm1529_vm10 = vcmp.ge.f32.partialorder %v1497_v8, 0.0  ;;  %v1561_v33 = vmul.f32 0.2, %v1497_v8  ;;  %vm1522_vm11 = vcmp.ge.f32.partialorder %v1490_v30, 0.0  ;;  %v1554_v44 = vmul.f32 0.2, %v1490_v30 }
 0x4f4   : > { %2554 = vmatpush3.bf16.msra.mxu0 %v2553_v46  ;;  %2595 = vmatpush3.bf16.msra.mxu1 %v2553_v46  ;;  %v1577_v40 = vsel %vm1513_vm9, %v1481_v7, %v1545_v32  ;;  %vm1538_vm12 = vcmp.ge.f32.partialorder %v1506_v9, 0.0  ;;  %v1570_v45 = vmul.f32 0.2, %v1506_v9  ;;  %v1482_v20 = vadd.f32 %v3630_v25, %v3612_v0  ;;  %v1624_v3 = vpop.permute.xlu1 %1623 }
 0x4f5   : > { %2556 = vmatprep.subr.bf16.mxu0 %v2555_v31  ;;  %2588 = vmatprep.subr.bf16.mxu1 %v2555_v31  ;;  %v1593_v35 = vsel %vm1529_vm10, %v1497_v8, %v1561_v33  ;;  %v1586_v38 = vsel %vm1522_vm11, %v1490_v30, %v1554_v44  ;;  %v1498_v39 = vadd.f32 %v3650_v23, %v3634_v27 }
 0x4f6   : > { %v2557_v26 = vpack.c.bf16 %v1593_v35, %v1577_v40  ;;  %v1602_v42 = vsel %vm1538_vm12, %v1506_v9, %v1570_v45  ;;  %vm1514_vm13 = vcmp.ge.f32.partialorder %v1482_v20, 0.0  ;;  %v1546_v12 = vmul.f32 0.2, %v1482_v20 }
 0x4f7   : > { %v2559_v34 = vpack.c.bf16 %v1602_v42, %v1586_v38  ;;  %vm1530_vm14 = vcmp.ge.f32.partialorder %v1498_v39, 0.0  ;;  %v1562_v54 = vmul.f32 0.2, %v1498_v39  ;;  %v1491_v28 = vadd.f32 %v3630_v25, %v3614_v1 }
 0x4f8   : > { %2558 = vmatpush3.bf16.msra.mxu0 %v2557_v26  ;;  %2596 = vmatpush3.bf16.msra.mxu1 %v2557_v26  ;;  %v1578_v0 = vsel %vm1514_vm13, %v1482_v20, %v1546_v12  ;;  %v1507_v53 = vadd.f32 %v3650_v23, %v3636_v47  ;;  %v1483_v49 = vadd.f32 %v3630_v25, %v3616_v2  ;;  %v1634_v33 = vpop.permute.xlu1 %1633  ;;  %v3095_v26 = vmov 1  }
 0x4f9   : > { %2560 = vmatprep.subr.bf16.mxu0 %v2559_v34  ;;  %2589 = vmatprep.subr.bf16.mxu1 %v2559_v34  ;;  %v1594_v27 = vsel %vm1530_vm14, %v1498_v39, %v1562_v54  ;;  %vm1523_vm15 = vcmp.ge.f32.partialorder %v1491_v28, 0.0  ;;  %v1555_v50 = vmul.f32 0.2, %v1491_v28  ;;  %v1499_v51 = vadd.f32 %v3650_v23, %v3638_v17  ;;  %v1604_v17 = vld [vmem:[#allocation15] sm:$0xff] }
 0x4fa   : > { %v2561_v36 = vpack.c.bf16 %v1594_v27, %v1578_v0  ;;  %vm1539_vm0 = vcmp.ge.f32.partialorder %v1507_v53, 0.0  ;;  %v1571_v1 = vmul.f32 0.2, %v1507_v53  ;;  %vm1515_vm1 = vcmp.ge.f32.partialorder %v1483_v49, 0.0  ;;  %v1608_v23 = vld [vmem:[#allocation15 + $0x20] sm:$0xff]  ;;  %2742 = vset.pattern.permute.xlu1 %v3095_v26  ;;  %2743 = vset.pattern.permute.xlu0 %v3095_v26 }
 0x4fb   : > { %vm1531_vm2 = vcmp.ge.f32.partialorder %v1499_v51, 0.0  ;;  %v1547_v37 = vmul.f32 0.2, %v1483_v49  ;;  %v1563_v29 = vmul.f32 0.2, %v1499_v51  ;;  %v1587_v47 = vsel %vm1523_vm15, %v1491_v28, %v1555_v50 }
 0x4fc   : > { %2562 = vmatpush3.bf16.msra.mxu0 %v2561_v36  ;;  %2597 = vmatpush3.bf16.msra.mxu1 %v2561_v36  ;;  %v1603_v18 = vsel %vm1539_vm0, %v1507_v53, %v1571_v1 }
 0x4fd   : > { %v2563_v2 = vpack.c.bf16 %v1603_v18, %v1587_v47  ;;  %v1579_v25 = vsel %vm1515_vm1, %v1483_v49, %v1547_v37  ;;  %v1595_v52 = vsel %vm1531_vm2, %v1499_v51, %v1563_v29 }
 0x4fe   : > { %v2565_v55 = vpack.c.bf16 %v1595_v52, %v1579_v25 }
 0x4ff   : > { %2564 = vmatprep.subr.bf16.mxu0 %v2563_v2  ;;  %2590 = vmatprep.subr.bf16.mxu1 %v2563_v2 }
 0x500   : > { %2566 = vmatpush3.bf16.msra.mxu0 %v2565_v55  ;;  %2598 = vmatpush3.bf16.msra.mxu1 %v2565_v55 }
 0x503   : > { %1701 = vmatmul.mubr.f32.vlgmr.msra.gmra.mrb[0].mxu0 %v1604_v17  ;;  %1711 = vmatmul.mubr.f32.vlgmr.msra.gmra.mrb[0].mxu1 %v1608_v23 }
 0x504   : > { %1705 = vmatprep.mubr.f32.mxu0 %v1607_v56  ;;  %1715 = vmatprep.mubr.f32.mxu1 %v1611_v57 }
 0x507   : > { %1706 = vmatmul.mubr.f32.gmra.mrb[2].mxu0 %v1606_v10  ;;  %1716 = vmatmul.mubr.f32.gmra.mrb[2].mxu1 %v1610_v58 }
 0x5d6   : > { %v2360_v61 = vpop.f32.mrb[0].mxu0  ;;  %v2366_v59 = vpop.f32.mrb[0].mxu1 }
 0x5d7   : > { %v2361_v62 = vpop.f32.mrb[1].mxu0  ;;  %v2367_v63 = vpop.f32.mrb[1].mxu1 }
 0x5d8   : > { %v2362_v19 = vadd.f32 %v2361_v62, %v2360_v61  ;;  %v2368_v60 = vadd.f32 %v2367_v63, %v2366_v59 }
 0x5da   : > { %v3699_v4 = vadd.f32 %v2362_v19, %v1619_v43  ;;  %v3701_v21 = vadd.f32 %v2368_v60, %v1629_v11  ;;  %v2363_v46 = vpop.f32.mrb[2].mxu0  ;;  %v2369_v16 = vpop.f32.mrb[2].mxu1 }
 0x5db   : > { %v2364_v7 = vpop.f32.mrb[3].mxu0  ;;  %v2370_v6 = vpop.f32.mrb[3].mxu1 }
 0x5dc   : > { %v2365_v8 = vadd.f32 %v2364_v7, %v2363_v46  ;;  %v2371_v30 = vadd.f32 %v2370_v6, %v2369_v16  ;;  %v1723_v31 = vmul.f32 %v3579_v24, %v3701_v21  ;;  %v1721_v32 = vmul.f32 %v3579_v24, %v3699_v4  ;;  %v1857_v6 = vld [vmem:[#allocation18] sm:$0xff] }
 0x5de   : > { %v3707_v9 = vadd.f32 %v2365_v8, %v1624_v3  ;;  %1729 = vadd.xlane.f32.xlu0 %v1723_v31  ;;  %1725 = vadd.xlane.f32.xlu1 %v1721_v32  ;;  %v3709_v44 = vadd.f32 %v2371_v30, %v1634_v33  ;;  %v1737_v40 = vmul.f32 %v1721_v32, %v3699_v4 }
 0x5df   : > { %v1739_v38 = vmul.f32 %v1723_v31, %v3701_v21 }
 0x5e0   : > { %v1722_v45 = vmul.f32 %v3579_v24, %v3707_v9  ;;  %v1724_v35 = vmul.f32 %v3579_v24, %v3709_v44 }
 0x5e2   : > { %1741 = vadd.xlane.f32.xlu1 %v1737_v40  ;;  %1727 = vadd.xlane.f32.xlu0 %v1722_v45  ;;  %v1738_v20 = vmul.f32 %v1722_v45, %v3707_v9  ;;  %v1740_v39 = vmul.f32 %v1724_v35, %v3709_v44 }
 0x5e6   : > { %1743 = vadd.xlane.f32.xlu0 %v1738_v20  ;;  %1731 = vadd.xlane.f32.xlu1 %v1724_v35  ;;  %v1859_v35 = vld [vmem:[#allocation18 + $0x10] sm:$0xff] }
 0x5ea   : > { %1745 = vadd.xlane.f32.xlu0 %v1739_v38  ;;  %1747 = vadd.xlane.f32.xlu1 %v1740_v39  ;;  %v1858_v38 = vld [vmem:[#allocation18 + $0x8] sm:$0xff] }
 0x66b   : > { %v1730_v42 = vpop.xlane.xlu0 %1729  ;;  %v1726_v12 = vpop.xlane.xlu1 %1725 }
 0x66c   : > { %v1733_v34 = vmul.f32 0.5, %v1726_v12  ;;  %v1735_v27 = vmul.f32 0.5, %v1730_v42 }
 0x66e   : > { %v1753_v0 = vmul.f32 %v1733_v34, %v1733_v34  ;;  %v1755_v18 = vmul.f32 %v1735_v27, %v1735_v27 }
 0x66f   : > { %v1728_v54 = vpop.xlane.xlu0 %1727  ;;  %v1742_v28 = vpop.xlane.xlu1 %1741 }
 0x670   : > { %v1734_v53 = vmul.f32 0.5, %v1728_v54  ;;  %v1749_v49 = vmul.f32 0.5, %v1742_v28 }
 0x672   : > { %v1757_v24 = vsub.f32 %v1749_v49, %v1753_v0  ;;  %v1754_v36 = vmul.f32 %v1734_v53, %v1734_v53 }
 0x673   : > { %v1744_v50 = vpop.xlane.xlu0 %1743  ;;  %v1732_v51 = vpop.xlane.xlu1 %1731 }
 0x674   : > { %v1761_v1 = vadd.f32 1e-05, %v1757_v24  ;;  %v1750_v37 = vmul.f32 0.5, %v1744_v50  ;;  %v1736_v29 = vmul.f32 0.5, %v1732_v51 }
 0x676   : > { %2753 = vrsqrt.f32 %v1761_v1  ;;  %v1758_v47 = vsub.f32 %v1750_v37, %v1754_v36  ;;  %v1756_v55 = vmul.f32 %v1736_v29, %v1736_v29 }
 0x677   : > { %v1746_v2 = vpop.xlane.xlu0 %1745  ;;  %v1748_v25 = vpop.xlane.xlu1 %1747 }
 0x678   : > { %v1762_v52 = vadd.f32 1e-05, %v1758_v47  ;;  %v1751_v17 = vmul.f32 0.5, %v1746_v2  ;;  %v1752_v23 = vmul.f32 0.5, %v1748_v25 }
 0x67a   : > { %2755 = vrsqrt.f32 %v1762_v52  ;;  %v1759_v56 = vsub.f32 %v1751_v17, %v1755_v18  ;;  %v1760_v57 = vsub.f32 %v1752_v23, %v1756_v55 }
 0x67c   : > { %v1763_v10 = vadd.f32 1e-05, %v1759_v56  ;;  %v1764_v58 = vadd.f32 1e-05, %v1760_v57 }
 0x67e   : > { %2757 = vrsqrt.f32 %v1763_v10  ;;  %v1901_v10 = vshrl.u32 %v451_v22, 7 }
 0x67f   : > { %2759 = vrsqrt.f32 %v1764_v58 }
 0x680   : > { %v2754_v43 = vpop.eup %2753 }
 0x681   : > { %v1769_v11 = vmul.f32 %v2754_v43, %v3590_v13 }
 0x683   : > { %v1773_v61 = vmul.f32 %v1769_v11, %v1733_v34 }
 0x684   : > { %v2756_v59 = vpop.eup %2755 }
 0x685   : > { %1781 = vrot.lane.b32.xlu0 %v1773_v61, %s3096_s27  ;;  %v1770_v62 = vmul.f32 %v2756_v59, %v3595_v41 }
 0x687   : > { %v1774_v63 = vmul.f32 %v1770_v62, %v1734_v53 }
 0x688   : > { %v2758_v19 = vpop.eup %2757 }
 0x689   : > { %v2760_v60 = vpop.eup %2759  ;;  %1783 = vrot.lane.b32.xlu1 %v1774_v63, %s3096_s27  ;;  %v1771_v3 = vmul.f32 %v2758_v19, %v3593_v14 }
 0x68a   : > { %v1772_v46 = vmul.f32 %v2760_v60, %v3599_v15 }
 0x68b   : > { %v1775_v16 = vmul.f32 %v1771_v3, %v1735_v27 }
 0x68c   : > { %v1776_v7 = vmul.f32 %v1772_v46, %v1736_v29 }
 0x68d   : > { %1785 = vrot.lane.b32.xlu1 %v1775_v16, %s3096_s27 }
 0x68e   : > { %1787 = vrot.lane.b32.xlu0 %v1776_v7, %s3096_s27 }
 0x691   : > { %1799 = vperm.xlu1 %2742, %v1769_v11   ;;  %v1902_v11 = vsub.s32 0, %v1901_v10 }
 0x692   : > { %1804 = vperm.xlu0 %2743, %v1770_v62  }
 0x695   : > { %1809 = vperm.xlu1 %2742, %v1771_v3  }
 0x696   : > { %2746 = vset.pattern.permute.xlu0 %v3094_v5 }
 0x699   : > { %1814 = vperm.xlu1 %2742, %v1772_v46  }
 0x69d   : > { %2744 = vset.pattern.permute.xlu1 %v3092_v48 }
 0x69e   : > { %1863 = vperm.xlu1 %2744, %v1857_v6  }
 0x6a2   : > { %2745 = vset.pattern.permute.xlu1 %v3094_v5  ;;  %v1860_v5 = vld [vmem:[#allocation18 + $0x18] sm:$0xff] }
 0x6f7   : > { %v1782_v8 = vpop.permute.xlu0 %1781 }
 0x6f8   : > { %v1793_v30 = vsub.f32 %v3590_v13, %v1782_v8  ;;  %v1894_v13 = vld [vmem:[#allocation5] sm:$0x1] }
 0x6fa   : > { %1823 = vperm.xlu1 %2745, %v1793_v30  }
 0x6fb   : > { %v1784_v31 = vpop.permute.xlu1 %1783 }
 0x6fc   : > { %v1794_v32 = vsub.f32 %v3595_v41, %v1784_v31 }
 0x6fe   : > { %1828 = vperm.xlu0 %2746, %v1794_v32  }
 0x6ff   : > { %v1786_v33 = vpop.permute.xlu1 %1785 }
 0x700   : > { %v1788_v40 = vpop.permute.xlu0 %1787  ;;  %v1795_v45 = vsub.f32 %v3593_v14, %v1786_v33 }
 0x701   : > { %v1796_v20 = vsub.f32 %v3599_v15, %v1788_v40 }
 0x702   : > { %1833 = vperm.xlu1 %2745, %v1795_v45  }
 0x703   : > { %1838 = vperm.xlu0 %2746, %v1796_v20  }
 0x706   : > { %2748 = vset.pattern.permute.xlu1 %v3092_v48 }
 0x707   : > { %2747 = vset.pattern.permute.xlu0 %v3092_v48  ;;  %1873 = vperm.xlu1 %2748, %v1859_v35  }
 0x708   : > { %1868 = vperm.xlu0 %2747, %v1858_v38  }
 0x70b   : > { %1878 = vperm.xlu1 %2748, %v1860_v5  }
 0x70c   : > { %1897 = vperm.xlu0 %2747, %v1894_v13  }
 0x710   : > { %v1800_v41 = vpop.permute.xlu1 %1799 }
 0x711   : > { %v1805_v42 = vpop.permute.xlu0 %1804  ;;  %v1817_v12 = vmul.f32 %v1800_v41, %v3699_v4 }
 0x712   : > { %v1818_v34 = vmul.f32 %v1805_v42, %v3707_v9 }
 0x714   : > { %v1810_v39 = vpop.permute.xlu1 %1809 }
 0x715   : > { %v1819_v48 = vmul.f32 %v1810_v39, %v3701_v21 }
 0x718   : > { %v1815_v26 = vpop.permute.xlu1 %1814 }
 0x719   : > { %v1820_v53 = vmul.f32 %v1815_v26, %v3709_v44 }
 0x71d   : > { %v1864_v14 = vpop.permute.xlu1 %1863 }
 0x779   : > { %v1824_v15 = vpop.permute.xlu1 %1823 }
 0x77a   : > { %v1841_v54 = vadd.f32 %v1824_v15, %v1817_v12 }
 0x77c   : > { %v1849_v49 = vmul.f32 0.2, %v1841_v54  ;;  %vm1845_vm3 = vcmp.ge.f32.partialorder %v1841_v54, 0.0 }
 0x77d   : > { %v1829_v28 = vpop.permute.xlu0 %1828 }
 0x77e   : > { %v1842_v0 = vadd.f32 %v1829_v28, %v1818_v34  ;;  %v1853_v4 = vsel %vm1845_vm3, %v1841_v54, %v1849_v49 }
 0x77f   : > { %v1881_v21 = vmul.f32 %v1864_v14, %v1853_v4 }
 0x780   : > { %v1850_v51 = vmul.f32 0.2, %v1842_v0  ;;  %vm1846_vm4 = vcmp.ge.f32.partialorder %v1842_v0, 0.0 }
 0x781   : > { %v1834_v24 = vpop.permute.xlu1 %1833 }
 0x782   : > { %v1839_v27 = vpop.permute.xlu0 %1838  ;;  %v1843_v50 = vadd.f32 %v1834_v24, %v1819_v48  ;;  %v1854_v29 = vsel %vm1846_vm4, %v1842_v0, %v1850_v51 }
 0x783   : > { %v1844_v36 = vadd.f32 %v1839_v27, %v1820_v53 }
 0x784   : > { %v1851_v1 = vmul.f32 0.2, %v1843_v50  ;;  %vm1847_vm5 = vcmp.ge.f32.partialorder %v1843_v50, 0.0 }
 0x785   : > { %v1852_v37 = vmul.f32 0.2, %v1844_v36  ;;  %vm1848_vm6 = vcmp.ge.f32.partialorder %v1844_v36, 0.0 }
 0x786   : > { %v1874_v9 = vpop.permute.xlu1 %1873  ;;  %v1855_v18 = vsel %vm1847_vm5, %v1843_v50, %v1851_v1 }
 0x787   : > { %v1869_v47 = vpop.permute.xlu0 %1868  ;;  %v1883_v25 = vmul.f32 %v1874_v9, %v1855_v18  ;;  %v1856_v52 = vsel %vm1848_vm6, %v1844_v36, %v1852_v37 }
 0x788   : > { %v1882_v2 = vmul.f32 %v1869_v47, %v1854_v29 }
 0x78a   : > { %v1885_v44 = vadd.f32 %v1882_v2, %v1881_v21  ;;  %v1879_v55 = vpop.permute.xlu1 %1878 }
 0x78b   : > { %v1884_v17 = vmul.f32 %v1879_v55, %v1856_v52  ;;  %v1898_v59 = vpop.permute.xlu0 %1897 }
 0x78c   : > { %v1886_v23 = vadd.f32 %v1885_v44, %v1883_v25  ;;  %v1903_v63 = vrot.slane %v1898_v59, %v1902_v11 }
 0x78e   : > { %v1887_v56 = vadd.f32 %v1886_v23, %v1884_v17 }
 0x790   : > { %v1888_v57 = vrot.slane %v1887_v56, 4 }
 0x792   : > { %v1889_v58 = vadd.f32 %v1888_v57, %v1887_v56 }
 0x794   : > { %v1890_v43 = vrot.slane %v1889_v58, 2 }
 0x796   : > { %v1891_v61 = vadd.f32 %v1890_v43, %v1889_v58 }
 0x798   : > { %v1892_v62 = vrot.slane %v1891_v61, 1 }
 0x79a   : > { %v1893_v19 = vadd.f32 %v1892_v62, %v1891_v61 }
 0x79c   : > { %v1904_v60 = vadd.f32 %v1903_v63, %v1893_v19 }
 0x79e   : > { %v1905_v3 = vand.u32 2147483647, %v1904_v60  ;;  %vm1912_vm7 = vcmp.ge.f32.partialorder %v1904_v60, 0.0 }
 0x7a0   : > { %v1906_v46 = vsub.f32 0.0, %v1905_v3 }
 0x7a2   : > { %v1907_v16 = vmul.f32 1.442695, %v1906_v46 }
 0x7a4   : > { %2761 = vpow2.f32 %v1907_v16 }
 0x7ae   : > { %v2762_v7 = vpop.eup %2761 }
 0x7af   : > { %v1909_v6 = vadd.f32 1.0, %v2762_v7 }
 0x7b1   : > { %2763 = vrcp.f32 %v1909_v6 }
 0x7bb   : > { %v2764_v8 = vpop.eup %2763 }
 0x7bc   : > { %v1913_v30 = vmul.f32 %v2764_v8, %v2762_v7 }
 0x7be   : > { %v1914_v22 = vsel %vm1912_vm7, %v2764_v8, %v1913_v30 }
 0x7bf   : > { %1915 = vst [vmem:[#allocation20] sm:$0x1] %v1914_v22 }
 0x7c0 PF: > { %p2676_p10 = scmp.eq.s32.totalorder %s3172_s16, 24  ;;  %s3097_s14 = smov [#allocation20]  }
 0x7c1   : > { %s1923_s29 = sshll.u32 %s3097_s14, 4  ;;  %s1924_s29 = int_to_ptr.vmem [resolvable:$true] %s1923_s29 }
 0x7c2   : > { %s2991_s3 = scalar_lea.vmem %s1924_s29, 16  ;;  %s2997_s22 = scalar_lea.vmem %s1924_s29, 32 }
 0x7c3   : > { %p2992_p8 = scmp.ne.s32.totalorder %s1924_s29, %s2991_s3  ;;  %p2998_p3 = scmp.lt.s32.totalorder %s1924_s29, %s1924_s29 }
 0x7c4   : > { %p2999_p6 = scmp.lt.s32.totalorder %s2997_s22, %s2991_s3 }
 0x7c5   : > { %p2993_p1 = pnand %p2992_p8, %p2676_p10 }
 0x7c6   : > { %p3000_p4 = por %p2999_p6, %p2998_p3 }
 0x7c7   : > { %p2994_p7 = pneg %p2993_p1 }
 0x7c9   : > { %p3001_p11 = pnand %p3000_p4, %p2994_p7 }
 0x7cb   : > { %3004 = shalt.err (!%p3001_p11)
}
 0x7cc   : > { %s3005_s24 = scalar_lea.hbm %s3782_s9, 16 }
 0x7cd   : > { %p3006_p12 = scmp.ne.s32.totalorder %s3782_s9, %s3005_s24  ;;  %p3011_p2 = scmp.lt.u32.totalorder %s3005_s24, %s3782_s9 }
 0x7cf   : > { %p3007_p13 = pnand %p3006_p12, %p2676_p10 }
 0x7d1   : > { %p3008_p0 = pneg %p3007_p13 }
 0x7d3   : > { %p3013_p5 = pnand %p3011_p2, %p3008_p0 }
 0x7d5   : > { %3016 = shalt.err (!%p3013_p5)
}
 0x7d6   : > { %2632 = dma.vmem_to_hbm [thread:$0]  (%p2676_p10), %s1924_s29, 16, %s3782_s9, [#allocation8]  }
 0x7d7   : > { %3054 = dma.done.wait (%p2676_p10), [#allocation8], 16  }
 0x7d8   : > { %3056 = vsyncadd (%p2676_p10), [#allocation8], 4294967280 }
 0x7d9 PF: > { %p26_p9 = scmp.ge.s32.totalorder %s3355_s18, 27   ;;  %s3811_s11 = smov %s3063_s12 }
 0x7da   : > { %s3812_s12 = smov %s3067_s13  ;;  %s3813_s13 = smov %s3366_s26 }
 0x7db   : > { %s3814_s14 = smov %s3355_s18  ;;  %28 = sbr.rel (!%p26_p9) target bundleno = 11 (0xb), region = 130 }
 0x7e2   :  { %1936 = vsyncpa [#allocation7], 1 }
 0x7e3   :  { %1938 = vsyncpa [#allocation7 + $0x1], 1 }
 0x7e4   :  { %1939 = vsyncpa [#allocation10], 1 }
 0x7e5   :  { %1940 = vsyncpa [#allocation13], 1 }
 0x7e6   :  { %1941 = vsyncpa [#allocation16], 1 }
 0x7e7   :  { %1942 = vsyncpa [#allocation19], 1 }
 0x7e8   :  { %1943 = vsyncpa [#allocation8], 1 }
 0x7e9   :  { %1945 = vsyncpa [#allocation8 + $0x1], 1 }

</bundles_post_ra>
